<compile_context>
chip_gen: v7x
topology: tpu7x:2x2x1
jax: 0.10.0
libtpu: 0.0.40
codegen_flags: <defaults>
</compile_context>

<pallas_src>
import numpy as np

import jax
import jax.numpy as jnp
from jax.experimental import pallas as pl
from jax.experimental.pallas import tpu as pltpu


# ---------------------------------------------------------------------------
# Parameter preparation (pure JAX / numpy, tiny, done in the wrapper)
# ---------------------------------------------------------------------------

def _banded_conv_weight(w, win, k_pad, half_pad):
    """Torch conv weight (Cout, Cin, K, K) -> per-kh banded matmul weights.

    Returns (K, k_pad, 2*half_pad) float32.  Row index = w_in*Cin + ci (padded
    with zero rows to k_pad).  Column index: columns are grouped by the parity
    of the output w position; each parity half holds (wo//2)*Cout + co and is
    zero-padded to half_pad lanes (so both halves are 128-lane aligned).
    """
    Cout, Cin, K, _ = (int(d) for d in w.shape)
    wout = win - K + 1
    half_real = (wout // 2) * Cout

    # E[kw, w_in, wo] = 1  iff  w_in == wo + kw
    E = np.zeros((K, win, wout), np.float32)
    for kw in range(K):
        for wo in range(wout):
            E[kw, wo + kw, wo] = 1.0

    # band[kh, w_in, ci, wo, co] = w[co, ci, kh, w_in - wo]  (0 elsewhere)
    band = jnp.einsum('aiw,ocha->hicwo', jnp.asarray(E), w.astype(jnp.float32))

    # reorder the wo axis: even positions first, then odd positions
    order = np.concatenate([np.arange(0, wout, 2), np.arange(1, wout, 2)])
    band = band[:, :, :, order, :]
    band = band.reshape(K, win * Cin, wout * Cout)

    be = jnp.pad(band[:, :, :half_real], ((0, 0), (0, 0), (0, half_pad - half_real)))
    bo = jnp.pad(band[:, :, half_real:], ((0, 0), (0, 0), (0, half_pad - half_real)))
    band = jnp.concatenate([be, bo], axis=-1)                      # (K, win*Cin, 2*half_pad)
    band = jnp.pad(band, ((0, 0), (0, k_pad - win * Cin), (0, 0)))  # pad K-dim rows
    return band


def _permute_fc1_weight(fw1):
    """fw1: (320, 50) = torch fc1.weight.T (rows in torch (c, h, w) order).

    Returns (512, 50): rows reordered to the kernel's flattened layout
    row = h*128 + (w*20 + c), with each h-block zero-padded from 80 to 128.
    This folds torch's NCHW `view(-1, 320)` into the weights for free.
    """
    hh, ww, cc = np.meshgrid(np.arange(4), np.arange(4), np.arange(20), indexing='ij')
    src = (cc * 16 + hh * 4 + ww).reshape(-1)        # torch row index for (h, w, c)
    blk = fw1[src, :].reshape(4, 80, fw1.shape[1])
    blk = jnp.pad(blk, ((0, 0), (0, 48), (0, 0)))
    return blk.reshape(4 * 128, fw1.shape[1])


# ---------------------------------------------------------------------------
# The fused Pallas kernel (whole forward pass for a block of TB images)
# ---------------------------------------------------------------------------

def _net_kernel(xe_ref, xo_ref, w1b_ref, b1t_ref, w2b_ref, b2t_ref,
                fw1_ref, fb1_ref, fw2_ref, fb2_ref, out_ref,
                h1_s, p2_s, fcin_s):
    f32 = jnp.float32
    TB = xe_ref.shape[0]

    for img in range(TB):
        # ---- conv1: banded matmuls; even/odd output rows kept separate ----
        acc_e = jnp.zeros((12, 256), f32)   # conv1 rows 0,2,...,22
        acc_o = jnp.zeros((12, 256), f32)   # conv1 rows 1,3,...,23
        for q in range(3):                  # kernel rows kh = 0, 2, 4
            wk = w1b_ref[2 * q]             # (28, 256)
            acc_e = acc_e + jnp.dot(xe_ref[img, q:q + 12, :], wk,
                                    preferred_element_type=f32)
            acc_o = acc_o + jnp.dot(xo_ref[img, q:q + 12, :], wk,
                                    preferred_element_type=f32)
        for q in range(2):                  # kernel rows kh = 1, 3
            wk = w1b_ref[2 * q + 1]
            acc_e = acc_e + jnp.dot(xo_ref[img, q:q + 12, :], wk,
                                    preferred_element_type=f32)
            acc_o = acc_o + jnp.dot(xe_ref[img, q + 1:q + 13, :], wk,
                                    preferred_element_type=f32)
        # 2x2 max-pool + bias + ReLU  ->  h1 (12, 128), lane = w*10 + c (pad 120..127 = 0)
        m = jnp.maximum(acc_e, acc_o)                    # H-pool
        m = jnp.maximum(m[:, :128], m[:, 128:])          # W-pool (aligned halves)
        h1_s[...] = jnp.maximum(m + b1t_ref[...], 0.0)

        # ---- conv2: banded matmuls.  Dropout2d == identity in eval mode. ----
        acc2 = jnp.zeros((8, 256), f32)
        for kh in range(5):
            acc2 = acc2 + jnp.dot(h1_s[kh:kh + 8, :], w2b_ref[kh],
                                  preferred_element_type=f32)
        p2 = jnp.maximum(acc2[:, :128], acc2[:, 128:])   # W-pool
        p2_s[...] = jnp.maximum(p2 + b2t_ref[...], 0.0)  # bias + ReLU, (8, 128)

        # ---- H-pool of conv2 + flatten into (h, w, c) layout (128-padded per h) ----
        for i in range(4):
            fcin_s[img:img + 1, 128 * i:128 * (i + 1)] = jnp.maximum(
                p2_s[2 * i:2 * i + 1, :], p2_s[2 * i + 1:2 * i + 2, :])

    # ---- FC head for the whole block: fc1 -> relu -> fc2 -> log_softmax ----
    h = jnp.dot(fcin_s[...], fw1_ref[...], preferred_element_type=jnp.float32)
    h = jnp.maximum(h + fb1_ref[...], 0.0)
    # TODO(synk): F.dropout training-mode randomness not reproduced (eval = identity).
    logits = jnp.dot(h, fw2_ref[...], preferred_element_type=jnp.float32) + fb2_ref[...]
    mx = jnp.max(logits, axis=1, keepdims=True)
    s = logits - mx
    lse = jnp.log(jnp.sum(jnp.exp(s), axis=1, keepdims=True))
    out_ref[...] = (s - lse).astype(out_ref.dtype)


# ---------------------------------------------------------------------------
# Wrapper
# ---------------------------------------------------------------------------

def net_forward(x_nchw, params):
    (cw1, cb1, cw2, cb2, fw1, fb1, fw2, fb2) = params
    B = int(x_nchw.shape[0])
    assert tuple(x_nchw.shape[1:]) == (1, 28, 28), x_nchw.shape

    TB = B if B <= 8 else 8
    Bp = ((B + TB - 1) // TB) * TB

    x = x_nchw.reshape(B, 28, 28).astype(jnp.float32)
    if Bp != B:
        x = jnp.pad(x, ((0, Bp - B), (0, 0), (0, 0)))
    xe = x[:, 0::2, :]                                   # even image rows (Bp, 14, 28)
    xo = x[:, 1::2, :]                                   # odd  image rows (Bp, 14, 28)

    # one-time (tiny) parameter re-layouts
    w1b = _banded_conv_weight(cw1, win=28, k_pad=28, half_pad=128)    # (5, 28, 256)
    w2b = _banded_conv_weight(cw2, win=12, k_pad=128, half_pad=128)   # (5, 128, 256)
    b1t = jnp.concatenate([jnp.tile(cb1, 12), jnp.zeros((8,), jnp.float32)]).reshape(1, 128)
    b2t = jnp.concatenate([jnp.tile(cb2, 4), jnp.zeros((48,), jnp.float32)]).reshape(1, 128)
    fw1p = _permute_fc1_weight(fw1)                                   # (512, 50)
    fb1r = fb1.reshape(1, 50)
    fb2r = fb2.reshape(1, 10)

    out = pl.pallas_call(
        _net_kernel,
        out_shape=jax.ShapeDtypeStruct((Bp, 10), jnp.float32),
        grid=(Bp // TB,),
        in_specs=[
            pl.BlockSpec((TB, 14, 28), lambda i: (i, 0, 0)),    # xe
            pl.BlockSpec((TB, 14, 28), lambda i: (i, 0, 0)),    # xo
            pl.BlockSpec((5, 28, 256), lambda i: (0, 0, 0)),    # conv1 banded weights
            pl.BlockSpec((1, 128), lambda i: (0, 0)),           # conv1 bias tile
            pl.BlockSpec((5, 128, 256), lambda i: (0, 0, 0)),   # conv2 banded weights
            pl.BlockSpec((1, 128), lambda i: (0, 0)),           # conv2 bias tile
            pl.BlockSpec((512, 50), lambda i: (0, 0)),          # fc1 weight (permuted+padded)
            pl.BlockSpec((1, 50), lambda i: (0, 0)),            # fc1 bias
            pl.BlockSpec((50, 10), lambda i: (0, 0)),           # fc2 weight
            pl.BlockSpec((1, 10), lambda i: (0, 0)),            # fc2 bias
        ],
        out_specs=pl.BlockSpec((TB, 10), lambda i: (i, 0)),
        scratch_shapes=[
            pltpu.VMEM((12, 128), jnp.float32),   # pooled/relu'd conv1 (per image)
            pltpu.VMEM((8, 128), jnp.float32),    # W-pooled/relu'd conv2 (per image)
            pltpu.VMEM((TB, 512), jnp.float32),   # flattened fc inputs for the block
        ],
        compiler_params=pltpu.CompilerParams(dimension_semantics=("parallel",)),
    )(xe, xo, w1b, b1t, w2b, b2t, fw1p, fb1r, fw2, fb2r)
    return out[:B]


# ---------------------------------------------------------------------------
# Pure-JAX reference (for correctness checking only)
# ---------------------------------------------------------------------------

def _reference_forward(x_nchw, params):
    (cw1, cb1, cw2, cb2, fw1, fb1, fw2, fb2) = params
    dn = ('NCHW', 'OIHW', 'NCHW')
    hi = jax.lax.Precision.HIGHEST
    y = jax.lax.conv_general_dilated(x_nchw.astype(jnp.float32), cw1, (1, 1), 'VALID',
                                     dimension_numbers=dn, precision=hi)
    y = y + cb1[None, :, None, None]
    y = jax.lax.reduce_window(y, -jnp.inf, jax.lax.max, (1, 1, 2, 2), (1, 1, 2, 2), 'VALID')
    y = jnp.maximum(y, 0.0)
    y = jax.lax.conv_general_dilated(y, cw2, (1, 1), 'VALID',
                                     dimension_numbers=dn, precision=hi)
    y = y + cb2[None, :, None, None]
    y = jax.lax.reduce_window(y, -jnp.inf, jax.lax.max, (1, 1, 2, 2), (1, 1, 2, 2), 'VALID')
    y = jnp.maximum(y, 0.0)
    y = y.reshape(y.shape[0], 320)
    y = jnp.maximum(jnp.dot(y, fw1, precision=hi) + fb1, 0.0)
    y = jnp.dot(y, fw2, precision=hi) + fb2
    return jax.nn.log_softmax(y, axis=1)


def init_params(key):
    ks = jax.random.split(key, 8)
    s = 0.1
    cw1 = s * jax.random.normal(ks[0], (10, 1, 5, 5), jnp.float32)
    cb1 = s * jax.random.normal(ks[1], (10,), jnp.float32)
    cw2 = s * jax.random.normal(ks[2], (20, 10, 5, 5), jnp.float32)
    cb2 = s * jax.random.normal(ks[3], (20,), jnp.float32)
    fw1 = s * jax.random.normal(ks[4], (320, 50), jnp.float32)   # = torch fc1.weight.T
    fb1 = s * jax.random.normal(ks[5], (50,), jnp.float32)
    fw2 = s * jax.random.normal(ks[6], (50, 10), jnp.float32)    # = torch fc2.weight.T
    fb2 = s * jax.random.normal(ks[7], (10,), jnp.float32)
    return (cw1, cb1, cw2, cb2, fw1, fb1, fw2, fb2)


if __name__ == "__main__":
    key = jax.random.PRNGKey(0)
    kp, kx = jax.random.split(key)
    params = init_params(kp)
    x = jax.random.normal(kx, (2, 1, 28, 28), jnp.float32)

    fwd = jax.jit(net_forward)
    out = jax.block_until_ready(fwd(x, params))

    assert out.shape == (2, 10), out.shape
    assert out.dtype == jnp.float32
    # log_softmax rows should sum (in prob space) to ~1
    assert jnp.allclose(jnp.exp(out).sum(axis=1), 1.0, atol=1e-4)
    # match the pure-JAX reference forward pass
    ref = jax.block_until_ready(jax.jit(_reference_forward)(x, params))
    assert jnp.allclose(out, ref, atol=1e-2, rtol=1e-2), float(jnp.max(jnp.abs(out - ref)))
    print("KERNEL_OK")
</pallas_src>

<mosaic_0001>
module attributes {stable_mosaic.version = 11 : i64} {
  func.func @_net_kernel(%arg0: i32, %arg1: memref<2x14x28xf32, #tpu.memory_space<vmem>>, %arg2: memref<2x14x28xf32, #tpu.memory_space<vmem>>, %arg3: memref<5x28x256xf32, #tpu.memory_space<vmem>>, %arg4: memref<1x128xf32, #tpu.memory_space<vmem>>, %arg5: memref<5x128x256xf32, #tpu.memory_space<vmem>>, %arg6: memref<1x128xf32, #tpu.memory_space<vmem>>, %arg7: memref<512x50xf32, #tpu.memory_space<vmem>>, %arg8: memref<1x50xf32, #tpu.memory_space<vmem>>, %arg9: memref<50x10xf32, #tpu.memory_space<vmem>>, %arg10: memref<1x10xf32, #tpu.memory_space<vmem>>, %arg11: memref<2x10xf32, #tpu.memory_space<vmem>>, %arg12: memref<12x128xf32, #tpu.memory_space<vmem>>, %arg13: memref<8x128xf32, #tpu.memory_space<vmem>>, %arg14: memref<2x512xf32, #tpu.memory_space<vmem>>) attributes {dimension_semantics = [#tpu.dimension_semantics<parallel>], iteration_bounds = array<i64: 1>, scalar_prefetch = 0 : i64, scratch_operands = 3 : i64, tpu.core_type = #tpu.core_type<tc>, window_params = [{transform_indices = @transform_0, window_bounds = array<i64: 2, 14, 28>}, {transform_indices = @transform_1, window_bounds = array<i64: 2, 14, 28>}, {pipeline_mode = #tpu.pipeline_mode<synchronous>, transform_indices = @transform_2, window_bounds = array<i64: 5, 28, 256>}, {pipeline_mode = #tpu.pipeline_mode<synchronous>, transform_indices = @transform_3, window_bounds = array<i64: 1, 128>}, {pipeline_mode = #tpu.pipeline_mode<synchronous>, transform_indices = @transform_4, window_bounds = array<i64: 5, 128, 256>}, {pipeline_mode = #tpu.pipeline_mode<synchronous>, transform_indices = @transform_5, window_bounds = array<i64: 1, 128>}, {pipeline_mode = #tpu.pipeline_mode<synchronous>, transform_indices = @transform_6, window_bounds = array<i64: 512, 50>}, {pipeline_mode = #tpu.pipeline_mode<synchronous>, transform_indices = @transform_7, window_bounds = array<i64: 1, 50>}, {pipeline_mode = #tpu.pipeline_mode<synchronous>, transform_indices = @transform_8, window_bounds = array<i64: 50, 10>}, {pipeline_mode = #tpu.pipeline_mode<synchronous>, transform_indices = @transform_9, window_bounds = array<i64: 1, 10>}, {transform_indices = @transform_10, window_bounds = array<i64: 2, 10>}]} {
    %cst = arith.constant 0.000000e+00 : f32
    %0 = vector.broadcast %cst : f32 to vector<12x256xf32>
    %cst_0 = arith.constant 0.000000e+00 : f32
    %1 = vector.broadcast %cst_0 : f32 to vector<12x256xf32>
    %c0 = arith.constant 0 : index
    %c0_1 = arith.constant 0 : index
    %c0_2 = arith.constant 0 : index
    %2 = vector.load %arg3[%c0, %c0_1, %c0_2] : memref<5x28x256xf32, #tpu.memory_space<vmem>>, vector<1x28x256xf32>
    %3 = vector.shape_cast %2 : vector<1x28x256xf32> to vector<28x256xf32>
    %c0_3 = arith.constant 0 : index
    %c0_4 = arith.constant 0 : index
    %c0_5 = arith.constant 0 : index
    %4 = vector.load %arg1[%c0_3, %c0_4, %c0_5] : memref<2x14x28xf32, #tpu.memory_space<vmem>>, vector<1x12x28xf32>
    %5 = vector.shape_cast %4 : vector<1x12x28xf32> to vector<12x28xf32>
    %cst_6 = arith.constant dense<0.000000e+00> : vector<12x256xf32>
    %6 = tpu.matmul %5, %3, %cst_6 {dimension_numbers = #tpu.dot_dimension_numbers<[1], [0], [0], [1], [0, 0, 1, 1], [], []>} : vector<12x28xf32>, vector<28x256xf32>, vector<12x256xf32> -> vector<12x256xf32>
    %7 = arith.addf %0, %6 : vector<12x256xf32>
    %c0_7 = arith.constant 0 : index
    %c0_8 = arith.constant 0 : index
    %c0_9 = arith.constant 0 : index
    %8 = vector.load %arg2[%c0_7, %c0_8, %c0_9] : memref<2x14x28xf32, #tpu.memory_space<vmem>>, vector<1x12x28xf32>
    %9 = vector.shape_cast %8 : vector<1x12x28xf32> to vector<12x28xf32>
    %cst_10 = arith.constant dense<0.000000e+00> : vector<12x256xf32>
    %10 = tpu.matmul %9, %3, %cst_10 {dimension_numbers = #tpu.dot_dimension_numbers<[1], [0], [0], [1], [0, 0, 1, 1], [], []>} : vector<12x28xf32>, vector<28x256xf32>, vector<12x256xf32> -> vector<12x256xf32>
    %11 = arith.addf %1, %10 : vector<12x256xf32>
    %c2 = arith.constant 2 : index
    %c0_11 = arith.constant 0 : index
    %c0_12 = arith.constant 0 : index
    %12 = vector.load %arg3[%c2, %c0_11, %c0_12] : memref<5x28x256xf32, #tpu.memory_space<vmem>>, vector<1x28x256xf32>
    %13 = vector.shape_cast %12 : vector<1x28x256xf32> to vector<28x256xf32>
    %c0_13 = arith.constant 0 : index
    %c1 = arith.constant 1 : index
    %c0_14 = arith.constant 0 : index
    %14 = vector.load %arg1[%c0_13, %c1, %c0_14] : memref<2x14x28xf32, #tpu.memory_space<vmem>>, vector<1x12x28xf32>
    %15 = vector.shape_cast %14 : vector<1x12x28xf32> to vector<12x28xf32>
    %cst_15 = arith.constant dense<0.000000e+00> : vector<12x256xf32>
    %16 = tpu.matmul %15, %13, %cst_15 {dimension_numbers = #tpu.dot_dimension_numbers<[1], [0], [0], [1], [0, 0, 1, 1], [], []>} : vector<12x28xf32>, vector<28x256xf32>, vector<12x256xf32> -> vector<12x256xf32>
    %17 = arith.addf %7, %16 : vector<12x256xf32>
    %c0_16 = arith.constant 0 : index
    %c1_17 = arith.constant 1 : index
    %c0_18 = arith.constant 0 : index
    %18 = vector.load %arg2[%c0_16, %c1_17, %c0_18] : memref<2x14x28xf32, #tpu.memory_space<vmem>>, vector<1x12x28xf32>
    %19 = vector.shape_cast %18 : vector<1x12x28xf32> to vector<12x28xf32>
    %cst_19 = arith.constant dense<0.000000e+00> : vector<12x256xf32>
    %20 = tpu.matmul %19, %13, %cst_19 {dimension_numbers = #tpu.dot_dimension_numbers<[1], [0], [0], [1], [0, 0, 1, 1], [], []>} : vector<12x28xf32>, vector<28x256xf32>, vector<12x256xf32> -> vector<12x256xf32>
    %21 = arith.addf %11, %20 : vector<12x256xf32>
    %c4 = arith.constant 4 : index
    %c0_20 = arith.constant 0 : index
    %c0_21 = arith.constant 0 : index
    %22 = vector.load %arg3[%c4, %c0_20, %c0_21] : memref<5x28x256xf32, #tpu.memory_space<vmem>>, vector<1x28x256xf32>
    %23 = vector.shape_cast %22 : vector<1x28x256xf32> to vector<28x256xf32>
    %c0_22 = arith.constant 0 : index
    %c2_23 = arith.constant 2 : index
    %c0_24 = arith.constant 0 : index
    %24 = vector.load %arg1[%c0_22, %c2_23, %c0_24] : memref<2x14x28xf32, #tpu.memory_space<vmem>>, vector<1x12x28xf32>
    %25 = vector.shape_cast %24 : vector<1x12x28xf32> to vector<12x28xf32>
    %cst_25 = arith.constant dense<0.000000e+00> : vector<12x256xf32>
    %26 = tpu.matmul %25, %23, %cst_25 {dimension_numbers = #tpu.dot_dimension_numbers<[1], [0], [0], [1], [0, 0, 1, 1], [], []>} : vector<12x28xf32>, vector<28x256xf32>, vector<12x256xf32> -> vector<12x256xf32>
    %27 = arith.addf %17, %26 : vector<12x256xf32>
    %c0_26 = arith.constant 0 : index
    %c2_27 = arith.constant 2 : index
    %c0_28 = arith.constant 0 : index
    %28 = vector.load %arg2[%c0_26, %c2_27, %c0_28] : memref<2x14x28xf32, #tpu.memory_space<vmem>>, vector<1x12x28xf32>
    %29 = vector.shape_cast %28 : vector<1x12x28xf32> to vector<12x28xf32>
    %cst_29 = arith.constant dense<0.000000e+00> : vector<12x256xf32>
    %30 = tpu.matmul %29, %23, %cst_29 {dimension_numbers = #tpu.dot_dimension_numbers<[1], [0], [0], [1], [0, 0, 1, 1], [], []>} : vector<12x28xf32>, vector<28x256xf32>, vector<12x256xf32> -> vector<12x256xf32>
    %31 = arith.addf %21, %30 : vector<12x256xf32>
    %c1_30 = arith.constant 1 : index
    %c0_31 = arith.constant 0 : index
    %c0_32 = arith.constant 0 : index
    %32 = vector.load %arg3[%c1_30, %c0_31, %c0_32] : memref<5x28x256xf32, #tpu.memory_space<vmem>>, vector<1x28x256xf32>
    %33 = vector.shape_cast %32 : vector<1x28x256xf32> to vector<28x256xf32>
    %c0_33 = arith.constant 0 : index
    %c0_34 = arith.constant 0 : index
    %c0_35 = arith.constant 0 : index
    %34 = vector.load %arg2[%c0_33, %c0_34, %c0_35] : memref<2x14x28xf32, #tpu.memory_space<vmem>>, vector<1x12x28xf32>
    %35 = vector.shape_cast %34 : vector<1x12x28xf32> to vector<12x28xf32>
    %cst_36 = arith.constant dense<0.000000e+00> : vector<12x256xf32>
    %36 = tpu.matmul %35, %33, %cst_36 {dimension_numbers = #tpu.dot_dimension_numbers<[1], [0], [0], [1], [0, 0, 1, 1], [], []>} : vector<12x28xf32>, vector<28x256xf32>, vector<12x256xf32> -> vector<12x256xf32>
    %37 = arith.addf %27, %36 : vector<12x256xf32>
    %c0_37 = arith.constant 0 : index
    %c1_38 = arith.constant 1 : index
    %c0_39 = arith.constant 0 : index
    %38 = vector.load %arg1[%c0_37, %c1_38, %c0_39] : memref<2x14x28xf32, #tpu.memory_space<vmem>>, vector<1x12x28xf32>
    %39 = vector.shape_cast %38 : vector<1x12x28xf32> to vector<12x28xf32>
    %cst_40 = arith.constant dense<0.000000e+00> : vector<12x256xf32>
    %40 = tpu.matmul %39, %33, %cst_40 {dimension_numbers = #tpu.dot_dimension_numbers<[1], [0], [0], [1], [0, 0, 1, 1], [], []>} : vector<12x28xf32>, vector<28x256xf32>, vector<12x256xf32> -> vector<12x256xf32>
    %41 = arith.addf %31, %40 : vector<12x256xf32>
    %c3 = arith.constant 3 : index
    %c0_41 = arith.constant 0 : index
    %c0_42 = arith.constant 0 : index
    %42 = vector.load %arg3[%c3, %c0_41, %c0_42] : memref<5x28x256xf32, #tpu.memory_space<vmem>>, vector<1x28x256xf32>
    %43 = vector.shape_cast %42 : vector<1x28x256xf32> to vector<28x256xf32>
    %c0_43 = arith.constant 0 : index
    %c1_44 = arith.constant 1 : index
    %c0_45 = arith.constant 0 : index
    %44 = vector.load %arg2[%c0_43, %c1_44, %c0_45] : memref<2x14x28xf32, #tpu.memory_space<vmem>>, vector<1x12x28xf32>
    %45 = vector.shape_cast %44 : vector<1x12x28xf32> to vector<12x28xf32>
    %cst_46 = arith.constant dense<0.000000e+00> : vector<12x256xf32>
    %46 = tpu.matmul %45, %43, %cst_46 {dimension_numbers = #tpu.dot_dimension_numbers<[1], [0], [0], [1], [0, 0, 1, 1], [], []>} : vector<12x28xf32>, vector<28x256xf32>, vector<12x256xf32> -> vector<12x256xf32>
    %47 = arith.addf %37, %46 : vector<12x256xf32>
    %c0_47 = arith.constant 0 : index
    %c2_48 = arith.constant 2 : index
    %c0_49 = arith.constant 0 : index
    %48 = vector.load %arg1[%c0_47, %c2_48, %c0_49] : memref<2x14x28xf32, #tpu.memory_space<vmem>>, vector<1x12x28xf32>
    %49 = vector.shape_cast %48 : vector<1x12x28xf32> to vector<12x28xf32>
    %cst_50 = arith.constant dense<0.000000e+00> : vector<12x256xf32>
    %50 = tpu.matmul %49, %43, %cst_50 {dimension_numbers = #tpu.dot_dimension_numbers<[1], [0], [0], [1], [0, 0, 1, 1], [], []>} : vector<12x28xf32>, vector<28x256xf32>, vector<12x256xf32> -> vector<12x256xf32>
    %51 = arith.addf %41, %50 : vector<12x256xf32>
    %52 = arith.maximumf %47, %51 : vector<12x256xf32>
    %53 = vector.extract_strided_slice %52 {offsets = [0, 0], sizes = [12, 128], strides = [1, 1]} : vector<12x256xf32> to vector<12x128xf32>
    %54 = vector.extract_strided_slice %52 {offsets = [0, 128], sizes = [12, 128], strides = [1, 1]} : vector<12x256xf32> to vector<12x128xf32>
    %55 = arith.maximumf %53, %54 : vector<12x128xf32>
    %c0_51 = arith.constant 0 : index
    %c0_52 = arith.constant 0 : index
    %56 = vector.load %arg4[%c0_51, %c0_52] : memref<1x128xf32, #tpu.memory_space<vmem>>, vector<1x128xf32>
    %57 = vector.broadcast %56 : vector<1x128xf32> to vector<12x128xf32>
    %58 = arith.addf %55, %57 : vector<12x128xf32>
    %cst_53 = arith.constant 0.000000e+00 : f32
    %59 = vector.broadcast %cst_53 : f32 to vector<12x128xf32>
    %60 = arith.maximumf %58, %59 : vector<12x128xf32>
    %c0_54 = arith.constant 0 : index
    %c0_55 = arith.constant 0 : index
    %61 = vector.load %arg12[%c0_54, %c0_55] : memref<12x128xf32, #tpu.memory_space<vmem>>, vector<12x128xf32>
    tpu.vector_store %arg12[%c0_54, %c0_55], %60 {strides = array<i32>} : memref<12x128xf32, #tpu.memory_space<vmem>>, vector<12x128xf32>,
    %cst_56 = arith.constant 0.000000e+00 : f32
    %62 = vector.broadcast %cst_56 : f32 to vector<8x256xf32>
    %c0_57 = arith.constant 0 : index
    %c0_58 = arith.constant 0 : index
    %63 = vector.load %arg12[%c0_57, %c0_58] : memref<12x128xf32, #tpu.memory_space<vmem>>, vector<8x128xf32>
    %c0_59 = arith.constant 0 : index
    %c0_60 = arith.constant 0 : index
    %c0_61 = arith.constant 0 : index
    %64 = vector.load %arg5[%c0_59, %c0_60, %c0_61] : memref<5x128x256xf32, #tpu.memory_space<vmem>>, vector<1x128x256xf32>
    %65 = vector.shape_cast %64 : vector<1x128x256xf32> to vector<128x256xf32>
    %cst_62 = arith.constant dense<0.000000e+00> : vector<8x256xf32>
    %66 = tpu.matmul %63, %65, %cst_62 {dimension_numbers = #tpu.dot_dimension_numbers<[1], [0], [0], [1], [0, 0, 1, 1], [], []>} : vector<8x128xf32>, vector<128x256xf32>, vector<8x256xf32> -> vector<8x256xf32>
    %67 = arith.addf %62, %66 : vector<8x256xf32>
    %c1_63 = arith.constant 1 : index
    %c0_64 = arith.constant 0 : index
    %68 = vector.load %arg12[%c1_63, %c0_64] : memref<12x128xf32, #tpu.memory_space<vmem>>, vector<8x128xf32>
    %c1_65 = arith.constant 1 : index
    %c0_66 = arith.constant 0 : index
    %c0_67 = arith.constant 0 : index
    %69 = vector.load %arg5[%c1_65, %c0_66, %c0_67] : memref<5x128x256xf32, #tpu.memory_space<vmem>>, vector<1x128x256xf32>
    %70 = vector.shape_cast %69 : vector<1x128x256xf32> to vector<128x256xf32>
    %cst_68 = arith.constant dense<0.000000e+00> : vector<8x256xf32>
    %71 = tpu.matmul %68, %70, %cst_68 {dimension_numbers = #tpu.dot_dimension_numbers<[1], [0], [0], [1], [0, 0, 1, 1], [], []>} : vector<8x128xf32>, vector<128x256xf32>, vector<8x256xf32> -> vector<8x256xf32>
    %72 = arith.addf %67, %71 : vector<8x256xf32>
    %c2_69 = arith.constant 2 : index
    %c0_70 = arith.constant 0 : index
    %73 = vector.load %arg12[%c2_69, %c0_70] : memref<12x128xf32, #tpu.memory_space<vmem>>, vector<8x128xf32>
    %c2_71 = arith.constant 2 : index
    %c0_72 = arith.constant 0 : index
    %c0_73 = arith.constant 0 : index
    %74 = vector.load %arg5[%c2_71, %c0_72, %c0_73] : memref<5x128x256xf32, #tpu.memory_space<vmem>>, vector<1x128x256xf32>
    %75 = vector.shape_cast %74 : vector<1x128x256xf32> to vector<128x256xf32>
    %cst_74 = arith.constant dense<0.000000e+00> : vector<8x256xf32>
    %76 = tpu.matmul %73, %75, %cst_74 {dimension_numbers = #tpu.dot_dimension_numbers<[1], [0], [0], [1], [0, 0, 1, 1], [], []>} : vector<8x128xf32>, vector<128x256xf32>, vector<8x256xf32> -> vector<8x256xf32>
    %77 = arith.addf %72, %76 : vector<8x256xf32>
    %c3_75 = arith.constant 3 : index
    %c0_76 = arith.constant 0 : index
    %78 = vector.load %arg12[%c3_75, %c0_76] : memref<12x128xf32, #tpu.memory_space<vmem>>, vector<8x128xf32>
    %c3_77 = arith.constant 3 : index
    %c0_78 = arith.constant 0 : index
    %c0_79 = arith.constant 0 : index
    %79 = vector.load %arg5[%c3_77, %c0_78, %c0_79] : memref<5x128x256xf32, #tpu.memory_space<vmem>>, vector<1x128x256xf32>
    %80 = vector.shape_cast %79 : vector<1x128x256xf32> to vector<128x256xf32>
    %cst_80 = arith.constant dense<0.000000e+00> : vector<8x256xf32>
    %81 = tpu.matmul %78, %80, %cst_80 {dimension_numbers = #tpu.dot_dimension_numbers<[1], [0], [0], [1], [0, 0, 1, 1], [], []>} : vector<8x128xf32>, vector<128x256xf32>, vector<8x256xf32> -> vector<8x256xf32>
    %82 = arith.addf %77, %81 : vector<8x256xf32>
    %c4_81 = arith.constant 4 : index
    %c0_82 = arith.constant 0 : index
    %83 = vector.load %arg12[%c4_81, %c0_82] : memref<12x128xf32, #tpu.memory_space<vmem>>, vector<8x128xf32>
    %c4_83 = arith.constant 4 : index
    %c0_84 = arith.constant 0 : index
    %c0_85 = arith.constant 0 : index
    %84 = vector.load %arg5[%c4_83, %c0_84, %c0_85] : memref<5x128x256xf32, #tpu.memory_space<vmem>>, vector<1x128x256xf32>
    %85 = vector.shape_cast %84 : vector<1x128x256xf32> to vector<128x256xf32>
    %cst_86 = arith.constant dense<0.000000e+00> : vector<8x256xf32>
    %86 = tpu.matmul %83, %85, %cst_86 {dimension_numbers = #tpu.dot_dimension_numbers<[1], [0], [0], [1], [0, 0, 1, 1], [], []>} : vector<8x128xf32>, vector<128x256xf32>, vector<8x256xf32> -> vector<8x256xf32>
    %87 = arith.addf %82, %86 : vector<8x256xf32>
    %88 = vector.extract_strided_slice %87 {offsets = [0, 0], sizes = [8, 128], strides = [1, 1]} : vector<8x256xf32> to vector<8x128xf32>
    %89 = vector.extract_strided_slice %87 {offsets = [0, 128], sizes = [8, 128], strides = [1, 1]} : vector<8x256xf32> to vector<8x128xf32>
    %90 = arith.maximumf %88, %89 : vector<8x128xf32>
    %c0_87 = arith.constant 0 : index
    %c0_88 = arith.constant 0 : index
    %91 = vector.load %arg6[%c0_87, %c0_88] : memref<1x128xf32, #tpu.memory_space<vmem>>, vector<1x128xf32>
    %92 = vector.broadcast %91 : vector<1x128xf32> to vector<8x128xf32>
    %93 = arith.addf %90, %92 : vector<8x128xf32>
    %cst_89 = arith.constant 0.000000e+00 : f32
    %94 = vector.broadcast %cst_89 : f32 to vector<8x128xf32>
    %95 = arith.maximumf %93, %94 : vector<8x128xf32>
    %c0_90 = arith.constant 0 : index
    %c0_91 = arith.constant 0 : index
    %96 = vector.load %arg13[%c0_90, %c0_91] : memref<8x128xf32, #tpu.memory_space<vmem>>, vector<8x128xf32>
    tpu.vector_store %arg13[%c0_90, %c0_91], %95 {strides = array<i32>} : memref<8x128xf32, #tpu.memory_space<vmem>>, vector<8x128xf32>,
    %c0_92 = arith.constant 0 : index
    %c0_93 = arith.constant 0 : index
    %97 = vector.load %arg13[%c0_92, %c0_93] : memref<8x128xf32, #tpu.memory_space<vmem>>, vector<1x128xf32>
    %c1_94 = arith.constant 1 : index
    %c0_95 = arith.constant 0 : index
    %98 = vector.load %arg13[%c1_94, %c0_95] : memref<8x128xf32, #tpu.memory_space<vmem>>, vector<1x128xf32>
    %99 = arith.maximumf %97, %98 : vector<1x128xf32>
    %c0_96 = arith.constant 0 : index
    %c0_97 = arith.constant 0 : index
    %100 = vector.load %arg14[%c0_96, %c0_97] : memref<2x512xf32, #tpu.memory_space<vmem>>, vector<1x128xf32>
    tpu.vector_store %arg14[%c0_96, %c0_97], %99 {strides = array<i32>} : memref<2x512xf32, #tpu.memory_space<vmem>>, vector<1x128xf32>,
    %c2_98 = arith.constant 2 : index
    %c0_99 = arith.constant 0 : index
    %101 = vector.load %arg13[%c2_98, %c0_99] : memref<8x128xf32, #tpu.memory_space<vmem>>, vector<1x128xf32>
    %c3_100 = arith.constant 3 : index
    %c0_101 = arith.constant 0 : index
    %102 = vector.load %arg13[%c3_100, %c0_101] : memref<8x128xf32, #tpu.memory_space<vmem>>, vector<1x128xf32>
    %103 = arith.maximumf %101, %102 : vector<1x128xf32>
    %c0_102 = arith.constant 0 : index
    %c128 = arith.constant 128 : index
    %104 = vector.load %arg14[%c0_102, %c128] : memref<2x512xf32, #tpu.memory_space<vmem>>, vector<1x128xf32>
    tpu.vector_store %arg14[%c0_102, %c128], %103 {strides = array<i32>} : memref<2x512xf32, #tpu.memory_space<vmem>>, vector<1x128xf32>,
    %c4_103 = arith.constant 4 : index
    %c0_104 = arith.constant 0 : index
    %105 = vector.load %arg13[%c4_103, %c0_104] : memref<8x128xf32, #tpu.memory_space<vmem>>, vector<1x128xf32>
    %c5 = arith.constant 5 : index
    %c0_105 = arith.constant 0 : index
    %106 = vector.load %arg13[%c5, %c0_105] : memref<8x128xf32, #tpu.memory_space<vmem>>, vector<1x128xf32>
    %107 = arith.maximumf %105, %106 : vector<1x128xf32>
    %c0_106 = arith.constant 0 : index
    %c256 = arith.constant 256 : index
    %108 = vector.load %arg14[%c0_106, %c256] : memref<2x512xf32, #tpu.memory_space<vmem>>, vector<1x128xf32>
    tpu.vector_store %arg14[%c0_106, %c256], %107 {strides = array<i32>} : memref<2x512xf32, #tpu.memory_space<vmem>>, vector<1x128xf32>,
    %c6 = arith.constant 6 : index
    %c0_107 = arith.constant 0 : index
    %109 = vector.load %arg13[%c6, %c0_107] : memref<8x128xf32, #tpu.memory_space<vmem>>, vector<1x128xf32>
    %c7 = arith.constant 7 : index
    %c0_108 = arith.constant 0 : index
    %110 = vector.load %arg13[%c7, %c0_108] : memref<8x128xf32, #tpu.memory_space<vmem>>, vector<1x128xf32>
    %111 = arith.maximumf %109, %110 : vector<1x128xf32>
    %c0_109 = arith.constant 0 : index
    %c384 = arith.constant 384 : index
    %112 = vector.load %arg14[%c0_109, %c384] : memref<2x512xf32, #tpu.memory_space<vmem>>, vector<1x128xf32>
    tpu.vector_store %arg14[%c0_109, %c384], %111 {strides = array<i32>} : memref<2x512xf32, #tpu.memory_space<vmem>>, vector<1x128xf32>,
    %cst_110 = arith.constant 0.000000e+00 : f32
    %113 = vector.broadcast %cst_110 : f32 to vector<12x256xf32>
    %cst_111 = arith.constant 0.000000e+00 : f32
    %114 = vector.broadcast %cst_111 : f32 to vector<12x256xf32>
    %c0_112 = arith.constant 0 : index
    %c0_113 = arith.constant 0 : index
    %c0_114 = arith.constant 0 : index
    %115 = vector.load %arg3[%c0_112, %c0_113, %c0_114] : memref<5x28x256xf32, #tpu.memory_space<vmem>>, vector<1x28x256xf32>
    %116 = vector.shape_cast %115 : vector<1x28x256xf32> to vector<28x256xf32>
    %c1_115 = arith.constant 1 : index
    %c0_116 = arith.constant 0 : index
    %c0_117 = arith.constant 0 : index
    %117 = vector.load %arg1[%c1_115, %c0_116, %c0_117] : memref<2x14x28xf32, #tpu.memory_space<vmem>>, vector<1x12x28xf32>
    %118 = vector.shape_cast %117 : vector<1x12x28xf32> to vector<12x28xf32>
    %cst_118 = arith.constant dense<0.000000e+00> : vector<12x256xf32>
    %119 = tpu.matmul %118, %116, %cst_118 {dimension_numbers = #tpu.dot_dimension_numbers<[1], [0], [0], [1], [0, 0, 1, 1], [], []>} : vector<12x28xf32>, vector<28x256xf32>, vector<12x256xf32> -> vector<12x256xf32>
    %120 = arith.addf %113, %119 : vector<12x256xf32>
    %c1_119 = arith.constant 1 : index
    %c0_120 = arith.constant 0 : index
    %c0_121 = arith.constant 0 : index
    %121 = vector.load %arg2[%c1_119, %c0_120, %c0_121] : memref<2x14x28xf32, #tpu.memory_space<vmem>>, vector<1x12x28xf32>
    %122 = vector.shape_cast %121 : vector<1x12x28xf32> to vector<12x28xf32>
    %cst_122 = arith.constant dense<0.000000e+00> : vector<12x256xf32>
    %123 = tpu.matmul %122, %116, %cst_122 {dimension_numbers = #tpu.dot_dimension_numbers<[1], [0], [0], [1], [0, 0, 1, 1], [], []>} : vector<12x28xf32>, vector<28x256xf32>, vector<12x256xf32> -> vector<12x256xf32>
    %124 = arith.addf %114, %123 : vector<12x256xf32>
    %c2_123 = arith.constant 2 : index
    %c0_124 = arith.constant 0 : index
    %c0_125 = arith.constant 0 : index
    %125 = vector.load %arg3[%c2_123, %c0_124, %c0_125] : memref<5x28x256xf32, #tpu.memory_space<vmem>>, vector<1x28x256xf32>
    %126 = vector.shape_cast %125 : vector<1x28x256xf32> to vector<28x256xf32>
    %c1_126 = arith.constant 1 : index
    %c1_127 = arith.constant 1 : index
    %c0_128 = arith.constant 0 : index
    %127 = vector.load %arg1[%c1_126, %c1_127, %c0_128] : memref<2x14x28xf32, #tpu.memory_space<vmem>>, vector<1x12x28xf32>
    %128 = vector.shape_cast %127 : vector<1x12x28xf32> to vector<12x28xf32>
    %cst_129 = arith.constant dense<0.000000e+00> : vector<12x256xf32>
    %129 = tpu.matmul %128, %126, %cst_129 {dimension_numbers = #tpu.dot_dimension_numbers<[1], [0], [0], [1], [0, 0, 1, 1], [], []>} : vector<12x28xf32>, vector<28x256xf32>, vector<12x256xf32> -> vector<12x256xf32>
    %130 = arith.addf %120, %129 : vector<12x256xf32>
    %c1_130 = arith.constant 1 : index
    %c1_131 = arith.constant 1 : index
    %c0_132 = arith.constant 0 : index
    %131 = vector.load %arg2[%c1_130, %c1_131, %c0_132] : memref<2x14x28xf32, #tpu.memory_space<vmem>>, vector<1x12x28xf32>
    %132 = vector.shape_cast %131 : vector<1x12x28xf32> to vector<12x28xf32>
    %cst_133 = arith.constant dense<0.000000e+00> : vector<12x256xf32>
    %133 = tpu.matmul %132, %126, %cst_133 {dimension_numbers = #tpu.dot_dimension_numbers<[1], [0], [0], [1], [0, 0, 1, 1], [], []>} : vector<12x28xf32>, vector<28x256xf32>, vector<12x256xf32> -> vector<12x256xf32>
    %134 = arith.addf %124, %133 : vector<12x256xf32>
    %c4_134 = arith.constant 4 : index
    %c0_135 = arith.constant 0 : index
    %c0_136 = arith.constant 0 : index
    %135 = vector.load %arg3[%c4_134, %c0_135, %c0_136] : memref<5x28x256xf32, #tpu.memory_space<vmem>>, vector<1x28x256xf32>
    %136 = vector.shape_cast %135 : vector<1x28x256xf32> to vector<28x256xf32>
    %c1_137 = arith.constant 1 : index
    %c2_138 = arith.constant 2 : index
    %c0_139 = arith.constant 0 : index
    %137 = vector.load %arg1[%c1_137, %c2_138, %c0_139] : memref<2x14x28xf32, #tpu.memory_space<vmem>>, vector<1x12x28xf32>
    %138 = vector.shape_cast %137 : vector<1x12x28xf32> to vector<12x28xf32>
    %cst_140 = arith.constant dense<0.000000e+00> : vector<12x256xf32>
    %139 = tpu.matmul %138, %136, %cst_140 {dimension_numbers = #tpu.dot_dimension_numbers<[1], [0], [0], [1], [0, 0, 1, 1], [], []>} : vector<12x28xf32>, vector<28x256xf32>, vector<12x256xf32> -> vector<12x256xf32>
    %140 = arith.addf %130, %139 : vector<12x256xf32>
    %c1_141 = arith.constant 1 : index
    %c2_142 = arith.constant 2 : index
    %c0_143 = arith.constant 0 : index
    %141 = vector.load %arg2[%c1_141, %c2_142, %c0_143] : memref<2x14x28xf32, #tpu.memory_space<vmem>>, vector<1x12x28xf32>
    %142 = vector.shape_cast %141 : vector<1x12x28xf32> to vector<12x28xf32>
    %cst_144 = arith.constant dense<0.000000e+00> : vector<12x256xf32>
    %143 = tpu.matmul %142, %136, %cst_144 {dimension_numbers = #tpu.dot_dimension_numbers<[1], [0], [0], [1], [0, 0, 1, 1], [], []>} : vector<12x28xf32>, vector<28x256xf32>, vector<12x256xf32> -> vector<12x256xf32>
    %144 = arith.addf %134, %143 : vector<12x256xf32>
    %c1_145 = arith.constant 1 : index
    %c0_146 = arith.constant 0 : index
    %c0_147 = arith.constant 0 : index
    %145 = vector.load %arg3[%c1_145, %c0_146, %c0_147] : memref<5x28x256xf32, #tpu.memory_space<vmem>>, vector<1x28x256xf32>
    %146 = vector.shape_cast %145 : vector<1x28x256xf32> to vector<28x256xf32>
    %c1_148 = arith.constant 1 : index
    %c0_149 = arith.constant 0 : index
    %c0_150 = arith.constant 0 : index
    %147 = vector.load %arg2[%c1_148, %c0_149, %c0_150] : memref<2x14x28xf32, #tpu.memory_space<vmem>>, vector<1x12x28xf32>
    %148 = vector.shape_cast %147 : vector<1x12x28xf32> to vector<12x28xf32>
    %cst_151 = arith.constant dense<0.000000e+00> : vector<12x256xf32>
    %149 = tpu.matmul %148, %146, %cst_151 {dimension_numbers = #tpu.dot_dimension_numbers<[1], [0], [0], [1], [0, 0, 1, 1], [], []>} : vector<12x28xf32>, vector<28x256xf32>, vector<12x256xf32> -> vector<12x256xf32>
    %150 = arith.addf %140, %149 : vector<12x256xf32>
    %c1_152 = arith.constant 1 : index
    %c1_153 = arith.constant 1 : index
    %c0_154 = arith.constant 0 : index
    %151 = vector.load %arg1[%c1_152, %c1_153, %c0_154] : memref<2x14x28xf32, #tpu.memory_space<vmem>>, vector<1x12x28xf32>
    %152 = vector.shape_cast %151 : vector<1x12x28xf32> to vector<12x28xf32>
    %cst_155 = arith.constant dense<0.000000e+00> : vector<12x256xf32>
    %153 = tpu.matmul %152, %146, %cst_155 {dimension_numbers = #tpu.dot_dimension_numbers<[1], [0], [0], [1], [0, 0, 1, 1], [], []>} : vector<12x28xf32>, vector<28x256xf32>, vector<12x256xf32> -> vector<12x256xf32>
    %154 = arith.addf %144, %153 : vector<12x256xf32>
    %c3_156 = arith.constant 3 : index
    %c0_157 = arith.constant 0 : index
    %c0_158 = arith.constant 0 : index
    %155 = vector.load %arg3[%c3_156, %c0_157, %c0_158] : memref<5x28x256xf32, #tpu.memory_space<vmem>>, vector<1x28x256xf32>
    %156 = vector.shape_cast %155 : vector<1x28x256xf32> to vector<28x256xf32>
    %c1_159 = arith.constant 1 : index
    %c1_160 = arith.constant 1 : index
    %c0_161 = arith.constant 0 : index
    %157 = vector.load %arg2[%c1_159, %c1_160, %c0_161] : memref<2x14x28xf32, #tpu.memory_space<vmem>>, vector<1x12x28xf32>
    %158 = vector.shape_cast %157 : vector<1x12x28xf32> to vector<12x28xf32>
    %cst_162 = arith.constant dense<0.000000e+00> : vector<12x256xf32>
    %159 = tpu.matmul %158, %156, %cst_162 {dimension_numbers = #tpu.dot_dimension_numbers<[1], [0], [0], [1], [0, 0, 1, 1], [], []>} : vector<12x28xf32>, vector<28x256xf32>, vector<12x256xf32> -> vector<12x256xf32>
    %160 = arith.addf %150, %159 : vector<12x256xf32>
    %c1_163 = arith.constant 1 : index
    %c2_164 = arith.constant 2 : index
    %c0_165 = arith.constant 0 : index
    %161 = vector.load %arg1[%c1_163, %c2_164, %c0_165] : memref<2x14x28xf32, #tpu.memory_space<vmem>>, vector<1x12x28xf32>
    %162 = vector.shape_cast %161 : vector<1x12x28xf32> to vector<12x28xf32>
    %cst_166 = arith.constant dense<0.000000e+00> : vector<12x256xf32>
    %163 = tpu.matmul %162, %156, %cst_166 {dimension_numbers = #tpu.dot_dimension_numbers<[1], [0], [0], [1], [0, 0, 1, 1], [], []>} : vector<12x28xf32>, vector<28x256xf32>, vector<12x256xf32> -> vector<12x256xf32>
    %164 = arith.addf %154, %163 : vector<12x256xf32>
    %165 = arith.maximumf %160, %164 : vector<12x256xf32>
    %166 = vector.extract_strided_slice %165 {offsets = [0, 0], sizes = [12, 128], strides = [1, 1]} : vector<12x256xf32> to vector<12x128xf32>
    %167 = vector.extract_strided_slice %165 {offsets = [0, 128], sizes = [12, 128], strides = [1, 1]} : vector<12x256xf32> to vector<12x128xf32>
    %168 = arith.maximumf %166, %167 : vector<12x128xf32>
    %c0_167 = arith.constant 0 : index
    %c0_168 = arith.constant 0 : index
    %169 = vector.load %arg4[%c0_167, %c0_168] : memref<1x128xf32, #tpu.memory_space<vmem>>, vector<1x128xf32>
    %170 = vector.broadcast %169 : vector<1x128xf32> to vector<12x128xf32>
    %171 = arith.addf %168, %170 : vector<12x128xf32>
    %cst_169 = arith.constant 0.000000e+00 : f32
    %172 = vector.broadcast %cst_169 : f32 to vector<12x128xf32>
    %173 = arith.maximumf %171, %172 : vector<12x128xf32>
    %c0_170 = arith.constant 0 : index
    %c0_171 = arith.constant 0 : index
    %174 = vector.load %arg12[%c0_170, %c0_171] : memref<12x128xf32, #tpu.memory_space<vmem>>, vector<12x128xf32>
    tpu.vector_store %arg12[%c0_170, %c0_171], %173 {strides = array<i32>} : memref<12x128xf32, #tpu.memory_space<vmem>>, vector<12x128xf32>,
    %cst_172 = arith.constant 0.000000e+00 : f32
    %175 = vector.broadcast %cst_172 : f32 to vector<8x256xf32>
    %c0_173 = arith.constant 0 : index
    %c0_174 = arith.constant 0 : index
    %176 = vector.load %arg12[%c0_173, %c0_174] : memref<12x128xf32, #tpu.memory_space<vmem>>, vector<8x128xf32>
    %c0_175 = arith.constant 0 : index
    %c0_176 = arith.constant 0 : index
    %c0_177 = arith.constant 0 : index
    %177 = vector.load %arg5[%c0_175, %c0_176, %c0_177] : memref<5x128x256xf32, #tpu.memory_space<vmem>>, vector<1x128x256xf32>
    %178 = vector.shape_cast %177 : vector<1x128x256xf32> to vector<128x256xf32>
    %cst_178 = arith.constant dense<0.000000e+00> : vector<8x256xf32>
    %179 = tpu.matmul %176, %178, %cst_178 {dimension_numbers = #tpu.dot_dimension_numbers<[1], [0], [0], [1], [0, 0, 1, 1], [], []>} : vector<8x128xf32>, vector<128x256xf32>, vector<8x256xf32> -> vector<8x256xf32>
    %180 = arith.addf %175, %179 : vector<8x256xf32>
    %c1_179 = arith.constant 1 : index
    %c0_180 = arith.constant 0 : index
    %181 = vector.load %arg12[%c1_179, %c0_180] : memref<12x128xf32, #tpu.memory_space<vmem>>, vector<8x128xf32>
    %c1_181 = arith.constant 1 : index
    %c0_182 = arith.constant 0 : index
    %c0_183 = arith.constant 0 : index
    %182 = vector.load %arg5[%c1_181, %c0_182, %c0_183] : memref<5x128x256xf32, #tpu.memory_space<vmem>>, vector<1x128x256xf32>
    %183 = vector.shape_cast %182 : vector<1x128x256xf32> to vector<128x256xf32>
    %cst_184 = arith.constant dense<0.000000e+00> : vector<8x256xf32>
    %184 = tpu.matmul %181, %183, %cst_184 {dimension_numbers = #tpu.dot_dimension_numbers<[1], [0], [0], [1], [0, 0, 1, 1], [], []>} : vector<8x128xf32>, vector<128x256xf32>, vector<8x256xf32> -> vector<8x256xf32>
    %185 = arith.addf %180, %184 : vector<8x256xf32>
    %c2_185 = arith.constant 2 : index
    %c0_186 = arith.constant 0 : index
    %186 = vector.load %arg12[%c2_185, %c0_186] : memref<12x128xf32, #tpu.memory_space<vmem>>, vector<8x128xf32>
    %c2_187 = arith.constant 2 : index
    %c0_188 = arith.constant 0 : index
    %c0_189 = arith.constant 0 : index
    %187 = vector.load %arg5[%c2_187, %c0_188, %c0_189] : memref<5x128x256xf32, #tpu.memory_space<vmem>>, vector<1x128x256xf32>
    %188 = vector.shape_cast %187 : vector<1x128x256xf32> to vector<128x256xf32>
    %cst_190 = arith.constant dense<0.000000e+00> : vector<8x256xf32>
    %189 = tpu.matmul %186, %188, %cst_190 {dimension_numbers = #tpu.dot_dimension_numbers<[1], [0], [0], [1], [0, 0, 1, 1], [], []>} : vector<8x128xf32>, vector<128x256xf32>, vector<8x256xf32> -> vector<8x256xf32>
    %190 = arith.addf %185, %189 : vector<8x256xf32>
    %c3_191 = arith.constant 3 : index
    %c0_192 = arith.constant 0 : index
    %191 = vector.load %arg12[%c3_191, %c0_192] : memref<12x128xf32, #tpu.memory_space<vmem>>, vector<8x128xf32>
    %c3_193 = arith.constant 3 : index
    %c0_194 = arith.constant 0 : index
    %c0_195 = arith.constant 0 : index
    %192 = vector.load %arg5[%c3_193, %c0_194, %c0_195] : memref<5x128x256xf32, #tpu.memory_space<vmem>>, vector<1x128x256xf32>
    %193 = vector.shape_cast %192 : vector<1x128x256xf32> to vector<128x256xf32>
    %cst_196 = arith.constant dense<0.000000e+00> : vector<8x256xf32>
    %194 = tpu.matmul %191, %193, %cst_196 {dimension_numbers = #tpu.dot_dimension_numbers<[1], [0], [0], [1], [0, 0, 1, 1], [], []>} : vector<8x128xf32>, vector<128x256xf32>, vector<8x256xf32> -> vector<8x256xf32>
    %195 = arith.addf %190, %194 : vector<8x256xf32>
    %c4_197 = arith.constant 4 : index
    %c0_198 = arith.constant 0 : index
    %196 = vector.load %arg12[%c4_197, %c0_198] : memref<12x128xf32, #tpu.memory_space<vmem>>, vector<8x128xf32>
    %c4_199 = arith.constant 4 : index
    %c0_200 = arith.constant 0 : index
    %c0_201 = arith.constant 0 : index
    %197 = vector.load %arg5[%c4_199, %c0_200, %c0_201] : memref<5x128x256xf32, #tpu.memory_space<vmem>>, vector<1x128x256xf32>
    %198 = vector.shape_cast %197 : vector<1x128x256xf32> to vector<128x256xf32>
    %cst_202 = arith.constant dense<0.000000e+00> : vector<8x256xf32>
    %199 = tpu.matmul %196, %198, %cst_202 {dimension_numbers = #tpu.dot_dimension_numbers<[1], [0], [0], [1], [0, 0, 1, 1], [], []>} : vector<8x128xf32>, vector<128x256xf32>, vector<8x256xf32> -> vector<8x256xf32>
    %200 = arith.addf %195, %199 : vector<8x256xf32>
    %201 = vector.extract_strided_slice %200 {offsets = [0, 0], sizes = [8, 128], strides = [1, 1]} : vector<8x256xf32> to vector<8x128xf32>
    %202 = vector.extract_strided_slice %200 {offsets = [0, 128], sizes = [8, 128], strides = [1, 1]} : vector<8x256xf32> to vector<8x128xf32>
    %203 = arith.maximumf %201, %202 : vector<8x128xf32>
    %c0_203 = arith.constant 0 : index
    %c0_204 = arith.constant 0 : index
    %204 = vector.load %arg6[%c0_203, %c0_204] : memref<1x128xf32, #tpu.memory_space<vmem>>, vector<1x128xf32>
    %205 = vector.broadcast %204 : vector<1x128xf32> to vector<8x128xf32>
    %206 = arith.addf %203, %205 : vector<8x128xf32>
    %cst_205 = arith.constant 0.000000e+00 : f32
    %207 = vector.broadcast %cst_205 : f32 to vector<8x128xf32>
    %208 = arith.maximumf %206, %207 : vector<8x128xf32>
    %c0_206 = arith.constant 0 : index
    %c0_207 = arith.constant 0 : index
    %209 = vector.load %arg13[%c0_206, %c0_207] : memref<8x128xf32, #tpu.memory_space<vmem>>, vector<8x128xf32>
    tpu.vector_store %arg13[%c0_206, %c0_207], %208 {strides = array<i32>} : memref<8x128xf32, #tpu.memory_space<vmem>>, vector<8x128xf32>,
    %c0_208 = arith.constant 0 : index
    %c0_209 = arith.constant 0 : index
    %210 = vector.load %arg13[%c0_208, %c0_209] : memref<8x128xf32, #tpu.memory_space<vmem>>, vector<1x128xf32>
    %c1_210 = arith.constant 1 : index
    %c0_211 = arith.constant 0 : index
    %211 = vector.load %arg13[%c1_210, %c0_211] : memref<8x128xf32, #tpu.memory_space<vmem>>, vector<1x128xf32>
    %212 = arith.maximumf %210, %211 : vector<1x128xf32>
    %c1_212 = arith.constant 1 : index
    %c0_213 = arith.constant 0 : index
    %213 = vector.load %arg14[%c1_212, %c0_213] : memref<2x512xf32, #tpu.memory_space<vmem>>, vector<1x128xf32>
    tpu.vector_store %arg14[%c1_212, %c0_213], %212 {strides = array<i32>} : memref<2x512xf32, #tpu.memory_space<vmem>>, vector<1x128xf32>,
    %c2_214 = arith.constant 2 : index
    %c0_215 = arith.constant 0 : index
    %214 = vector.load %arg13[%c2_214, %c0_215] : memref<8x128xf32, #tpu.memory_space<vmem>>, vector<1x128xf32>
    %c3_216 = arith.constant 3 : index
    %c0_217 = arith.constant 0 : index
    %215 = vector.load %arg13[%c3_216, %c0_217] : memref<8x128xf32, #tpu.memory_space<vmem>>, vector<1x128xf32>
    %216 = arith.maximumf %214, %215 : vector<1x128xf32>
    %c1_218 = arith.constant 1 : index
    %c128_219 = arith.constant 128 : index
    %217 = vector.load %arg14[%c1_218, %c128_219] : memref<2x512xf32, #tpu.memory_space<vmem>>, vector<1x128xf32>
    tpu.vector_store %arg14[%c1_218, %c128_219], %216 {strides = array<i32>} : memref<2x512xf32, #tpu.memory_space<vmem>>, vector<1x128xf32>,
    %c4_220 = arith.constant 4 : index
    %c0_221 = arith.constant 0 : index
    %218 = vector.load %arg13[%c4_220, %c0_221] : memref<8x128xf32, #tpu.memory_space<vmem>>, vector<1x128xf32>
    %c5_222 = arith.constant 5 : index
    %c0_223 = arith.constant 0 : index
    %219 = vector.load %arg13[%c5_222, %c0_223] : memref<8x128xf32, #tpu.memory_space<vmem>>, vector<1x128xf32>
    %220 = arith.maximumf %218, %219 : vector<1x128xf32>
    %c1_224 = arith.constant 1 : index
    %c256_225 = arith.constant 256 : index
    %221 = vector.load %arg14[%c1_224, %c256_225] : memref<2x512xf32, #tpu.memory_space<vmem>>, vector<1x128xf32>
    tpu.vector_store %arg14[%c1_224, %c256_225], %220 {strides = array<i32>} : memref<2x512xf32, #tpu.memory_space<vmem>>, vector<1x128xf32>,
    %c6_226 = arith.constant 6 : index
    %c0_227 = arith.constant 0 : index
    %222 = vector.load %arg13[%c6_226, %c0_227] : memref<8x128xf32, #tpu.memory_space<vmem>>, vector<1x128xf32>
    %c7_228 = arith.constant 7 : index
    %c0_229 = arith.constant 0 : index
    %223 = vector.load %arg13[%c7_228, %c0_229] : memref<8x128xf32, #tpu.memory_space<vmem>>, vector<1x128xf32>
    %224 = arith.maximumf %222, %223 : vector<1x128xf32>
    %c1_230 = arith.constant 1 : index
    %c384_231 = arith.constant 384 : index
    %225 = vector.load %arg14[%c1_230, %c384_231] : memref<2x512xf32, #tpu.memory_space<vmem>>, vector<1x128xf32>
    tpu.vector_store %arg14[%c1_230, %c384_231], %224 {strides = array<i32>} : memref<2x512xf32, #tpu.memory_space<vmem>>, vector<1x128xf32>,
    %c0_232 = arith.constant 0 : index
    %c0_233 = arith.constant 0 : index
    %226 = vector.load %arg14[%c0_232, %c0_233] : memref<2x512xf32, #tpu.memory_space<vmem>>, vector<2x512xf32>
    %c0_234 = arith.constant 0 : index
    %c0_235 = arith.constant 0 : index
    %227 = vector.load %arg7[%c0_234, %c0_235] : memref<512x50xf32, #tpu.memory_space<vmem>>, vector<512x50xf32>
    %cst_236 = arith.constant dense<0.000000e+00> : vector<2x50xf32>
    %228 = tpu.matmul %226, %227, %cst_236 {dimension_numbers = #tpu.dot_dimension_numbers<[1], [0], [0], [1], [0, 0, 1, 1], [], []>} : vector<2x512xf32>, vector<512x50xf32>, vector<2x50xf32> -> vector<2x50xf32>
    %c0_237 = arith.constant 0 : index
    %c0_238 = arith.constant 0 : index
    %229 = vector.load %arg8[%c0_237, %c0_238] : memref<1x50xf32, #tpu.memory_space<vmem>>, vector<1x50xf32>
    %230 = vector.broadcast %229 : vector<1x50xf32> to vector<2x50xf32>
    %231 = arith.addf %228, %230 : vector<2x50xf32>
    %cst_239 = arith.constant 0.000000e+00 : f32
    %232 = vector.broadcast %cst_239 : f32 to vector<2x50xf32>
    %233 = arith.maximumf %231, %232 : vector<2x50xf32>
    %c0_240 = arith.constant 0 : index
    %c0_241 = arith.constant 0 : index
    %234 = vector.load %arg9[%c0_240, %c0_241] : memref<50x10xf32, #tpu.memory_space<vmem>>, vector<50x10xf32>
    %cst_242 = arith.constant dense<0.000000e+00> : vector<2x10xf32>
    %235 = tpu.matmul %233, %234, %cst_242 {dimension_numbers = #tpu.dot_dimension_numbers<[1], [0], [0], [1], [0, 0, 1, 1], [], []>} : vector<2x50xf32>, vector<50x10xf32>, vector<2x10xf32> -> vector<2x10xf32>
    %c0_243 = arith.constant 0 : index
    %c0_244 = arith.constant 0 : index
    %236 = vector.load %arg10[%c0_243, %c0_244] : memref<1x10xf32, #tpu.memory_space<vmem>>, vector<1x10xf32>
    %237 = vector.broadcast %236 : vector<1x10xf32> to vector<2x10xf32>
    %238 = arith.addf %235, %237 : vector<2x10xf32>
    %cst_245 = arith.constant dense<0xFF800000> : vector<2xf32>
    %239 = vector.multi_reduction <maximumf>, %238, %cst_245 [1] : vector<2x10xf32> to vector<2xf32>
    %240 = vector.shape_cast %239 : vector<2xf32> to vector<2x1xf32>
    %241 = vector.broadcast %240 : vector<2x1xf32> to vector<2x10xf32>
    %242 = arith.subf %238, %241 : vector<2x10xf32>
    %243 = math.exp %242 : vector<2x10xf32>
    %cst_246 = arith.constant dense<0.000000e+00> : vector<2xf32>
    %244 = vector.multi_reduction <add>, %243, %cst_246 [1] : vector<2x10xf32> to vector<2xf32>
    %245 = vector.shape_cast %244 : vector<2xf32> to vector<2x1xf32>
    %246 = math.log %245 : vector<2x1xf32>
    %247 = vector.broadcast %246 : vector<2x1xf32> to vector<2x10xf32>
    %248 = arith.subf %242, %247 : vector<2x10xf32>
    %c0_247 = arith.constant 0 : index
    %c0_248 = arith.constant 0 : index
    %249 = vector.load %arg11[%c0_247, %c0_248] : memref<2x10xf32, #tpu.memory_space<vmem>>, vector<2x10xf32>
    tpu.vector_store %arg11[%c0_247, %c0_248], %248 {strides = array<i32>} : memref<2x10xf32, #tpu.memory_space<vmem>>, vector<2x10xf32>,
    return
  }
  func.func @transform_0(%arg0: i32) -> (i32, i32, i32) {
    %c0_i32 = arith.constant 0 : i32
    %c0_i32_0 = arith.constant 0 : i32
    %c0_i32_1 = arith.constant 0 : i32
    return %arg0, %c0_i32, %c0_i32_0 : i32, i32, i32
  }
  func.func @transform_1(%arg0: i32) -> (i32, i32, i32) {
    %c0_i32 = arith.constant 0 : i32
    %c0_i32_0 = arith.constant 0 : i32
    %c0_i32_1 = arith.constant 0 : i32
    return %arg0, %c0_i32, %c0_i32_0 : i32, i32, i32
  }
  func.func @transform_2(%arg0: i32) -> (i32, i32, i32) {
    %c0_i32 = arith.constant 0 : i32
    %c0_i32_0 = arith.constant 0 : i32
    %c0_i32_1 = arith.constant 0 : i32
    %c0_i32_2 = arith.constant 0 : i32
    return %c0_i32, %c0_i32_0, %c0_i32_1 : i32, i32, i32
  }
  func.func @transform_3(%arg0: i32) -> (i32, i32) {
    %c0_i32 = arith.constant 0 : i32
    %c0_i32_0 = arith.constant 0 : i32
    %c0_i32_1 = arith.constant 0 : i32
    return %c0_i32, %c0_i32_0 : i32, i32
  }
  func.func @transform_4(%arg0: i32) -> (i32, i32, i32) {
    %c0_i32 = arith.constant 0 : i32
    %c0_i32_0 = arith.constant 0 : i32
    %c0_i32_1 = arith.constant 0 : i32
    %c0_i32_2 = arith.constant 0 : i32
    return %c0_i32, %c0_i32_0, %c0_i32_1 : i32, i32, i32
  }
  func.func @transform_5(%arg0: i32) -> (i32, i32) {
    %c0_i32 = arith.constant 0 : i32
    %c0_i32_0 = arith.constant 0 : i32
    %c0_i32_1 = arith.constant 0 : i32
    return %c0_i32, %c0_i32_0 : i32, i32
  }
  func.func @transform_6(%arg0: i32) -> (i32, i32) {
    %c0_i32 = arith.constant 0 : i32
    %c0_i32_0 = arith.constant 0 : i32
    %c0_i32_1 = arith.constant 0 : i32
    return %c0_i32, %c0_i32_0 : i32, i32
  }
  func.func @transform_7(%arg0: i32) -> (i32, i32) {
    %c0_i32 = arith.constant 0 : i32
    %c0_i32_0 = arith.constant 0 : i32
    %c0_i32_1 = arith.constant 0 : i32
    return %c0_i32, %c0_i32_0 : i32, i32
  }
  func.func @transform_8(%arg0: i32) -> (i32, i32) {
    %c0_i32 = arith.constant 0 : i32
    %c0_i32_0 = arith.constant 0 : i32
    %c0_i32_1 = arith.constant 0 : i32
    return %c0_i32, %c0_i32_0 : i32, i32
  }
  func.func @transform_9(%arg0: i32) -> (i32, i32) {
    %c0_i32 = arith.constant 0 : i32
    %c0_i32_0 = arith.constant 0 : i32
    %c0_i32_1 = arith.constant 0 : i32
    return %c0_i32, %c0_i32_0 : i32, i32
  }
  func.func @transform_10(%arg0: i32) -> (i32, i32) {
    %c0_i32 = arith.constant 0 : i32
    %c0_i32_0 = arith.constant 0 : i32
    return %arg0, %c0_i32 : i32, i32
  }
}

</mosaic_0001>

<bundles_post_ra>
// kernel: tile.13
= control target key start
LH: loop header
LB: loop body
LE: loop exit
PB: predicated region body
PF: predicated region fallthrough
CT: control target
= control target key end

     0   :  { %s28_s0 = inlined_call_operand.vmem [shape: f32[10], index: 0, kind: input, shape index: {}]   ;;  %s29_s1 = inlined_call_operand.vmem [shape: f32[12,10], index: 1, kind: output, shape index: {}]  }
   0x1   :  { %v4_v0 = vld [vmem:[%s28_s0] ss:$0 sm:$0xff] }
   0x2   :  { %5 = vst [vmem:[%s29_s1] sm:$0xff] %v4_v0  ;;  %8 = vst [vmem:[%s29_s1 + $0x8] sm:$0xff] %v4_v0 }

// kernel: tile.14
= control target key start
LH: loop header
LB: loop body
LE: loop exit
PB: predicated region body
PF: predicated region fallthrough
CT: control target
= control target key end

     0   :  { %s99_s10 = smov 110   ;;  %s100_s11 = smov 90   ;;  %vm3_vm0 = vcmask 80896   ;;  %vm9_vm1 = vcmask 982896   ;;  %vm15_vm2 = vcmask 900896   ;;  %vm21_vm3 = vcmask 818896   ;;  %s159_s0 = inlined_call_operand.vmem [shape: f32[12,10], index: 0, kind: input, shape index: {}]   ;;  %s160_s1 = inlined_call_operand.vmem [shape: f32[120], index: 1, kind: output, shape index: {}]  }
   0x1   :  { %v77_v0 = vld [vmem:[%s159_s0 + $0xb] sm:$0x1]   ;;  %v79_v1 = vld [vmem:[%s159_s0 + $0x9] sm:$0x1]   ;;  %v78_v2 = vld [vmem:[%s159_s0 + $0xa] sm:$0x1]  }
   0x2   :  { %7 = vrot.lane.b32.xlu0 %v77_v0, %s99_s10  ;;  %19 = vrot.lane.b32.xlu1 %v79_v1, %s100_s11  ;;  %v80_v3 = vld [vmem:[%s159_s0 + $0x8] sm:$0x1]   ;;  %s101_s16 = smov 100   ;;  %s102_s17 = smov 80   ;;  %v81_v4 = vld [vmem:[%s159_s0 + $0x7] sm:$0x1]  }
   0x3   :  { %v2_v5 = vld [vmem:[%s159_s0] sm:$0x1]   ;;  %v82_v6 = vld [vmem:[%s159_s0 + $0x6] sm:$0x1]   ;;  %s103_s24 = smov 70   ;;  %s104_s25 = smov 60  }
   0x4   :  { %4 = vst.msk [vmem:[#allocation0] sm:$0x1] %vm3_vm0, %v2_v5   ;;  %v83_v7 = vld [vmem:[%s159_s0 + $0x5] sm:$0x1]   ;;  %v84_v8 = vld [vmem:[%s159_s0 + $0x4] sm:$0x1]  }
   0x5   :  { %s105_s30 = smov 50   ;;  %s106_s2 = smov 40   ;;  %v85_v9 = vld [vmem:[%s159_s0 + $0x3] sm:$0x1]   ;;  %v86_v10 = vld [vmem:[%s159_s0 + $0x2] sm:$0x1]  }
   0x6   :  { %13 = vrot.lane.b32.xlu0 %v78_v2, %s101_s16  ;;  %25 = vrot.lane.b32.xlu1 %v80_v3, %s102_s17  ;;  %s107_s7 = smov 30   ;;  %s108_s8 = smov 20   ;;  %v87_v11 = vld [vmem:[%s159_s0 + $0x1] sm:$0x1]   ;;  %vm27_vm4 = vcmask 736896   ;;  %vm33_vm5 = vcmask 654896  }
   0x7   :  { %s109_s0 = smov 10   ;;  %vm39_vm6 = vcmask 572896   ;;  %vm45_vm7 = vcmask 490896   ;;  %vm51_vm8 = vcmask 408896   ;;  %vm57_vm9 = vcmask 326896  }
   0x8   :  { %vm63_vm10 = vcmask 244896   ;;  %vm69_vm11 = vcmask 162896  }
   0xa   :  { %31 = vrot.lane.b32.xlu0 %v81_v4, %s103_s24  ;;  %37 = vrot.lane.b32.xlu1 %v82_v6, %s104_s25 }
   0xe   :  { %43 = vrot.lane.b32.xlu0 %v83_v7, %s105_s30  ;;  %49 = vrot.lane.b32.xlu1 %v84_v8, %s106_s2 }
  0x12   :  { %55 = vrot.lane.b32.xlu0 %v85_v9, %s107_s7  ;;  %61 = vrot.lane.b32.xlu1 %v86_v10, %s108_s8 }
  0x16   :  { %67 = vrot.lane.b32.xlu0 %v87_v11, %s109_s0 }
  0x74   :  { %v8_v12 = vpop.permute.xlu0 %7   ;;  %v20_v13 = vpop.permute.xlu1 %19  }
  0x75   :  { %10 = vst.msk [vmem:[#allocation0] sm:$0x1] %vm9_vm1, %v8_v12  }
  0x78   :  { %v14_v14 = vpop.permute.xlu0 %13   ;;  %v26_v15 = vpop.permute.xlu1 %25  }
  0x79   :  { %16 = vst.msk [vmem:[#allocation0] sm:$0x1] %vm15_vm2, %v14_v14  }
  0x7a   :  { %22 = vst.msk [vmem:[#allocation0] sm:$0x1] %vm21_vm3, %v20_v13  }
  0x7b   :  { %28 = vst.msk [vmem:[#allocation0] sm:$0x1] %vm27_vm4, %v26_v15  }
  0x7c   :  { %v32_v16 = vpop.permute.xlu0 %31   ;;  %v38_v17 = vpop.permute.xlu1 %37  }
  0x7d   :  { %34 = vst.msk [vmem:[#allocation0] sm:$0x1] %vm33_vm5, %v32_v16  }
  0x7e   :  { %40 = vst.msk [vmem:[#allocation0] sm:$0x1] %vm39_vm6, %v38_v17  }
  0x80   :  { %v44_v18 = vpop.permute.xlu0 %43   ;;  %v50_v19 = vpop.permute.xlu1 %49  }
  0x81   :  { %46 = vst.msk [vmem:[#allocation0] sm:$0x1] %vm45_vm7, %v44_v18  }
  0x82   :  { %52 = vst.msk [vmem:[#allocation0] sm:$0x1] %vm51_vm8, %v50_v19  }
  0x84   :  { %v56_v20 = vpop.permute.xlu0 %55   ;;  %v62_v21 = vpop.permute.xlu1 %61  }
  0x85   :  { %58 = vst.msk [vmem:[#allocation0] sm:$0x1] %vm57_vm9, %v56_v20  }
  0x86   :  { %64 = vst.msk [vmem:[#allocation0] sm:$0x1] %vm63_vm10, %v62_v21  }
  0x88   :  { %v68_v22 = vpop.permute.xlu0 %67  }
  0x89   :  { %70 = vst.msk [vmem:[#allocation0] sm:$0x1] %vm69_vm11, %v68_v22  }
  0x90   :  { %v74_v23 = vld [vmem:[#allocation0] sm:$0x1] }
  0x91   :  { %76 = vst [vmem:[%s160_s1] sm:$0x1] %v74_v23 }

// kernel: tile.18
= control target key start
LH: loop header
LB: loop body
LE: loop exit
PB: predicated region body
PF: predicated region fallthrough
CT: control target
= control target key end

     0   :  { %s22_s0 = inlined_call_operand.vmem [shape: f32[20], index: 0, kind: input, shape index: {}]   ;;  %s23_s1 = inlined_call_operand.vmem [shape: f32[4,20], index: 1, kind: output, shape index: {}]  }
   0x1   :  { %v4_v0 = vld [vmem:[%s22_s0] ss:$0 sm:$0xff] }
   0x2   :  { %5 = vst [vmem:[%s23_s1] sm:$0xf] %v4_v0 }

// kernel: tile.19
= control target key start
LH: loop header
LB: loop body
LE: loop exit
PB: predicated region body
PF: predicated region fallthrough
CT: control target
= control target key end

     0   :  { %vm7_vm0 = vcmask 162816   ;;  %s37_s8 = smov 20   ;;  %s38_s9 = smov 40   ;;  %vm13_vm1 = vcmask 654816   ;;  %vm19_vm2 = vcmask 490816   ;;  %vm25_vm3 = vcmask 326816   ;;  %s55_s0 = inlined_call_operand.vmem [shape: f32[4,20], index: 0, kind: input, shape index: {}]   ;;  %s56_s1 = inlined_call_operand.vmem [shape: f32[80], index: 1, kind: output, shape index: {}]  }
   0x1   :  { %v4_v0 = vld [vmem:[%s55_s0] sm:$0xf]  ;;  %s36_s0 = smov 60  }
   0x2   :  { %5 = vst [vmem:[#allocation1] sm:$0xf] %v4_v0 }
   0x9   :  { %v10_v1 = vld [vmem:[#allocation1 + $0x3] sm:$0x1]   ;;  %v22_v2 = vld [vmem:[#allocation1 + $0x1] sm:$0x1]   ;;  %v6_v3 = vld [vmem:[#allocation1] sm:$0x1]  }
   0xa   :  { %11 = vrot.lane.b32.xlu0 %v10_v1, %s36_s0  ;;  %23 = vrot.lane.b32.xlu1 %v22_v2, %s37_s8  ;;  %v16_v4 = vld [vmem:[#allocation1 + $0x2] sm:$0x1]   ;;  %8 = vst.msk [vmem:[#allocation0] sm:$0x1] %vm7_vm0, %v6_v3  }
   0xe   :  { %17 = vrot.lane.b32.xlu0 %v16_v4, %s38_s9 }
  0x7c   :  { %v12_v5 = vpop.permute.xlu0 %11   ;;  %v24_v6 = vpop.permute.xlu1 %23  }
  0x7d   :  { %14 = vst.msk [vmem:[#allocation0] sm:$0x1] %vm13_vm1, %v12_v5  }
  0x80   :  { %v18_v7 = vpop.permute.xlu0 %17  }
  0x81   :  { %20 = vst.msk [vmem:[#allocation0] sm:$0x1] %vm19_vm2, %v18_v7  }
  0x82   :  { %26 = vst.msk [vmem:[#allocation0] sm:$0x1] %vm25_vm3, %v24_v6  }
  0x89   :  { %v30_v8 = vld [vmem:[#allocation0] sm:$0x1] }
  0x8a   :  { %32 = vst [vmem:[%s56_s1] sm:$0x1] %v30_v8 }

// kernel: net_forward.1
= control target key start
LH: loop header
LB: loop body
LE: loop exit
PB: predicated region body
PF: predicated region fallthrough
CT: control target
= control target key end

     0   :  { %vm66_vm0 = vcmask 1043456   ;;  %v4594_v7 = vmov 0.0   ;;  %vm4595_vm1 = vmmov 1   ;;  %vm59_vm3 = vcmask 228352   ;;  %s6211_s0 = inlined_call_operand.vmem [shape: f32[2,14,28], index: 0, kind: input, shape index: {}]   ;;  %s6212_s1 = inlined_call_operand.vmem [shape: f32[2,14,28], index: 1, kind: input, shape index: {}]   ;;  %s6213_s2 = inlined_call_operand.vmem [shape: f32[5,28,256], index: 2, kind: input, shape index: {}]   ;;  %s6214_s3 = inlined_call_operand.vmem [shape: f32[1,128], index: 3, kind: input, shape index: {}]   ;;  %s6215_s4 = inlined_call_operand.vmem [shape: f32[5,128,256], index: 4, kind: input, shape index: {}]   ;;  %s6216_s5 = inlined_call_operand.vmem [shape: f32[1,128], index: 5, kind: input, shape index: {}]   ;;  %s6217_s6 = inlined_call_operand.vmem [shape: f32[512,50], index: 6, kind: input, shape index: {}]   ;;  %s6218_s7 = inlined_call_operand.vmem [shape: f32[1,50], index: 7, kind: input, shape index: {}]   ;;  %s6219_s8 = inlined_call_operand.vmem [shape: f32[50,10], index: 8, kind: input, shape index: {}]   ;;  %s6220_s9 = inlined_call_operand.vmem [shape: f32[1,10], index: 9, kind: input, shape index: {}]   ;;  %s6221_s10 = inlined_call_operand.hbm [shape: f32[2,10], index: 10, kind: output, shape index: {}]  }
   0x1   :  { %v3372_v0 = vld [vmem:[%s6213_s2 + $0x88] sm:$0xff]  ;;  %v3374_v1 = vld [vmem:[%s6213_s2 + $0x98] sm:$0xff]  ;;  %v3371_v2 = vld [vmem:[%s6213_s2 + $0x80] sm:$0xff]  ;;  %137 = vmatprep.mubr.f32.mxu0 %v4594_v7  ;;  %311 = vmatprep.mubr.f32.mxu1 %v4594_v7 }
   0x2   :  { %v4664_v3 = vpack.c.bf16 %v3374_v1, %v3372_v0  ;;  %v3373_v4 = vld [vmem:[%s6213_s2 + $0x90] sm:$0xff]  ;;  %v4672_v5 = vld [vmem:[%s6213_s2 + $0xa8] sm:$0xff]  ;;  %v3378_v6 = vld [vmem:[%s6213_s2 + $0xb8] sm:$0xf] }
   0x3   :  { %v4679_v8 = vpack.c.bf16 %v3373_v4, %v3371_v2  ;;  %v3890_v9 = vpack.c.bf16 %v3378_v6, %v4672_v5  ;;  %vm4682_vm2 = vmpackc.low %vm66_vm0, %vm4595_vm1  ;;  %v4689_v11 = vld [vmem:[%s6213_s2 + $0xa0] sm:$0xff]  ;;  %v3377_v12 = vld [vmem:[%s6213_s2 + $0xb0] sm:$0xf] }
   0x4   :  { %3887 = vmatprep.subr.bf16.mxu0 %v4664_v3  ;;  %3907 = vmatprep.subr.bf16.mxu1 %v4664_v3  ;;  %v37_v13 = vld [vmem:[%s6213_s2 + $0x8] sm:$0xff]  ;;  %v39_v14 = vld [vmem:[%s6213_s2 + $0x18] sm:$0xff]  ;;  %v3893_v15 = vpack.c.bf16 %v3377_v12, %v4689_v11  ;;  %v36_v17 = vld [vmem:[%s6213_s2] sm:$0xff] }
   0x5   :  { %3889 = vmatpush1.bf16.msra.mxu0 %v4679_v8  ;;  %3909 = vmatpush1.bf16.msra.mxu1 %v4679_v8  ;;  %v4709_v16 = vpack.c.bf16 %v39_v14, %v37_v13  ;;  %v38_v18 = vld [vmem:[%s6213_s2 + $0x10] sm:$0xff]  ;;  %v4720_v19 = vld [vmem:[%s6213_s2 + $0x28] sm:$0xff]  ;;  %v43_v20 = vld [vmem:[%s6213_s2 + $0x38] sm:$0xf] }
   0x6   :  { %3892 = vmatprep.subr.msk.bf16.mxu0 %vm4682_vm2, %v3890_v9  ;;  %3912 = vmatprep.subr.msk.bf16.mxu1 %vm4682_vm2, %v3890_v9  ;;  %v4732_v21 = vld [vmem:[%s6211_s0 + $0x1] sm:$0xff]  ;;  %v4739_v23 = vpack.c.bf16 %v38_v18, %v36_v17  ;;  %v42_v25 = vld [vmem:[%s6213_s2 + $0x30] sm:$0xf]  ;;  %v3900_v26 = vpack.c.bf16 %v43_v20, %v4720_v19  ;;  %v3398_v28 = vld [vmem:[%s6213_s2 + $0x118] sm:$0xff] }
   0x7   :  { %v4737_v22 = vld [vmem:[%s6212_s1 + $0x1] sm:$0xff]  ;;  %v4767_v29 = vld [vmem:[%s6211_s0 + $0x9] sm:$0xf]  ;;  %v3397_v33 = vld [vmem:[%s6213_s2 + $0x110] sm:$0xff] }
   0x8   :  { %v4746_v24 = vld [vmem:[%s6213_s2 + $0x20] sm:$0xff]  ;;  %v3396_v27 = vld [vmem:[%s6213_s2 + $0x108] sm:$0xff]  ;;  %v3402_v36 = vld [vmem:[%s6213_s2 + $0x138] sm:$0xf] }
   0x9   :  { %3895 = vmatpush1.bf16.msk.msra.mxu0 %vm4682_vm2, %v3893_v15  ;;  %3915 = vmatpush1.bf16.msk.msra.mxu1 %vm4682_vm2, %v3893_v15  ;;  %v4772_v30 = vld [vmem:[%s6212_s1 + $0x9] sm:$0xf]  ;;  %v3903_v31 = vpack.c.bf16 %v42_v25, %v4746_v24  ;;  %v3395_v32 = vld [vmem:[%s6213_s2 + $0x100] sm:$0xff]  ;;  %v4787_v34 = vpack.c.bf16 %v3398_v28, %v3396_v27  ;;  %v3401_v41 = vld [vmem:[%s6213_s2 + $0x130] sm:$0xf] }
   0xa   :  { %3897 = vmatprep.subr.bf16.mxu0 %v4709_v16  ;;  %3917 = vmatprep.subr.bf16.mxu1 %v4709_v16  ;;  %v4796_v35 = vld [vmem:[%s6213_s2 + $0x128] sm:$0xff]  ;;  %v44_v37 = vld [vmem:[%s6211_s0] sm:$0xff]  ;;  %v4813_v39 = vpack.c.bf16 %v3397_v33, %v3395_v32  ;;  %v3414_v44 = vld [vmem:[%s6213_s2 + $0x58] sm:$0xff] }
   0xb   :  { %v4811_v38 = vld [vmem:[%s6212_s1] sm:$0xff]  ;;  %v3930_v42 = vpack.c.bf16 %v3402_v36, %v4796_v35  ;;  %v3412_v43 = vld [vmem:[%s6213_s2 + $0x48] sm:$0xff]  ;;  %v3413_v49 = vld [vmem:[%s6213_s2 + $0x50] sm:$0xff] }
   0xc   :  { %3381 = vmatmul.mubr.msk.f32.vlgmr.msra.gmra.mrb[0].mxu0 %vm59_vm3, %v4732_v21  ;;  %3389 = vmatmul.mubr.msk.f32.vlgmr.msra.gmra.mrb[0].mxu1 %vm59_vm3, %v4737_v22  ;;  %v4820_v40 = vld [vmem:[%s6213_s2 + $0x120] sm:$0xff]  ;;  %v45_v45 = vld [vmem:[%s6211_s0 + $0x8] sm:$0xf]  ;;  %v4860_v50 = vpack.c.bf16 %v3414_v44, %v3412_v43  ;;  %v3418_v52 = vld [vmem:[%s6213_s2 + $0x78] sm:$0xf] }
   0xd   :  { %3899 = vmatpush1.bf16.msra.mxu0 %v4739_v23  ;;  %3919 = vmatpush1.bf16.msra.mxu1 %v4739_v23  ;;  %v4845_v46 = vld [vmem:[%s6212_s1 + $0x8] sm:$0xf]  ;;  %v3933_v47 = vpack.c.bf16 %v3401_v41, %v4820_v40  ;;  %v3411_v48 = vld [vmem:[%s6213_s2 + $0x40] sm:$0xff]  ;;  %v3417_v57 = vld [vmem:[%s6213_s2 + $0x70] sm:$0xf] }
   0xe   :  { %143 = vmatprep.mubr.f32.mxu0 %v4594_v7  ;;  %317 = vmatprep.mubr.f32.mxu1 %v4594_v7  ;;  %v4868_v51 = vld [vmem:[%s6213_s2 + $0x68] sm:$0xff]  ;;  %v4885_v55 = vpack.c.bf16 %v3413_v49, %v3411_v48  ;;  %v4892_v56 = vld [vmem:[%s6213_s2 + $0x60] sm:$0xff]  ;;  %v3430_v60 = vld [vmem:[%s6213_s2 + $0xd8] sm:$0xff] }
   0xf   :  { %3902 = vmatprep.subr.msk.bf16.mxu0 %vm4682_vm2, %v3900_v26  ;;  %3922 = vmatprep.subr.msk.bf16.mxu1 %vm4682_vm2, %v3900_v26  ;;  %v4880_v53 = vld [vmem:[%s6211_s0 + $0x2] sm:$0xff]  ;;  %v3950_v58 = vpack.c.bf16 %v3418_v52, %v4868_v51  ;;  %v4914_v61 = vld [vmem:[%s6211_s0 + $0xa] sm:$0xf]  ;;  %v3953_v63 = vpack.c.bf16 %v3417_v57, %v4892_v56  ;;  %v3429_v1 = vld [vmem:[%s6213_s2 + $0xd0] sm:$0xff] }
  0x10   :  { %3382 = vmatmul.mubr.msk.f32.gmra.mrb[2].mxu0 %vm59_vm3, %v4767_v29  ;;  %3390 = vmatmul.mubr.msk.f32.gmra.mrb[2].mxu1 %vm59_vm3, %v4772_v30  ;;  %v511_v54 = vld [vmem:[%s6212_s1 + $0x2] sm:$0xff]  ;;  %v512_v62 = vld [vmem:[%s6212_s1 + $0xa] sm:$0xf] }
  0x11   :  { %3905 = vmatpush1.bf16.msk.msra.mxu0 %vm4682_vm2, %v3903_v31  ;;  %3925 = vmatpush1.bf16.msk.msra.mxu1 %vm4682_vm2, %v3903_v31  ;;  %v3428_v59 = vld [vmem:[%s6213_s2 + $0xc8] sm:$0xff]  ;;  %v3427_v0 = vld [vmem:[%s6213_s2 + $0xc0] sm:$0xff] }
  0x12   :  { %226 = vmatprep.mubr.f32.mxu0 %v4594_v7  ;;  %394 = vmatprep.mubr.f32.mxu1 %v4594_v7 }
  0x13   :  { %3927 = vmatprep.subr.bf16.mxu0 %v4787_v34  ;;  %3937 = vmatprep.subr.bf16.mxu1 %v4787_v34 }
  0x14   :  { %3385 = vmatmul.mubr.msk.f32.vlgmr.msra.gmra.mrb[0].mxu0 %vm59_vm3, %v44_v37  ;;  %3393 = vmatmul.mubr.msk.f32.vlgmr.msra.gmra.mrb[0].mxu1 %vm59_vm3, %v4811_v38 }
  0x15   :  { %3929 = vmatpush1.bf16.msra.mxu0 %v4813_v39  ;;  %3939 = vmatpush1.bf16.msra.mxu1 %v4813_v39 }
  0x16   :  { %232 = vmatprep.mubr.f32.mxu0 %v4594_v7  ;;  %400 = vmatprep.mubr.f32.mxu1 %v4594_v7 }
  0x17   :  { %3932 = vmatprep.subr.msk.bf16.mxu0 %vm4682_vm2, %v3930_v42  ;;  %3942 = vmatprep.subr.msk.bf16.mxu1 %vm4682_vm2, %v3930_v42 }
  0x18   :  { %3386 = vmatmul.mubr.msk.f32.gmra.mrb[2].mxu0 %vm59_vm3, %v45_v45  ;;  %3394 = vmatmul.mubr.msk.f32.gmra.mrb[2].mxu1 %vm59_vm3, %v4845_v46 }
  0x19   :  { %3935 = vmatpush1.bf16.msk.msra.mxu0 %vm4682_vm2, %v3933_v47  ;;  %3945 = vmatpush1.bf16.msk.msra.mxu1 %vm4682_vm2, %v3933_v47 }
  0x1a   :  { %494 = vmatprep.mubr.f32.mxu0 %v4594_v7  ;;  %583 = vmatprep.mubr.f32.mxu1 %v4594_v7 }
  0x1b   :  { %3947 = vmatprep.subr.bf16.mxu0 %v4860_v50  ;;  %3957 = vmatprep.subr.bf16.mxu1 %v4860_v50 }
  0x1c   :  { %3405 = vmatmul.mubr.msk.f32.vlgmr.msra.gmra.mrb[0].mxu0 %vm59_vm3, %v4880_v53  ;;  %3409 = vmatmul.mubr.msk.f32.vlgmr.msra.gmra.mrb[0].mxu1 %vm59_vm3, %v511_v54 }
  0x1d   :  { %3949 = vmatpush1.bf16.msra.mxu0 %v4885_v55  ;;  %3959 = vmatpush1.bf16.msra.mxu1 %v4885_v55 }
  0x1e   :  { %500 = vmatprep.mubr.f32.mxu0 %v4594_v7  ;;  %589 = vmatprep.mubr.f32.mxu1 %v4594_v7 }
  0x1f   :  { %15 = vsyncpa [#allocation6], 0  ;;  %3952 = vmatprep.subr.msk.bf16.mxu0 %vm4682_vm2, %v3950_v58  ;;  %3962 = vmatprep.subr.msk.bf16.mxu1 %vm4682_vm2, %v3950_v58  ;;  %v4932_v2 = vpack.c.bf16 %v3430_v60, %v3428_v59  ;;  %v4940_v4 = vld [vmem:[%s6213_s2 + $0xe8] sm:$0xff]  ;;  %v3434_v6 = vld [vmem:[%s6213_s2 + $0xf8] sm:$0xf]  ;;  %v4949_v9 = vpack.c.bf16 %v3429_v1, %v3427_v0  ;;  %vm3269_vm4 = vcmask 1041408  }
  0x20   :  { %3406 = vmatmul.mubr.msk.f32.gmra.mrb[2].mxu0 %vm59_vm3, %v4914_v61  ;;  %3410 = vmatmul.mubr.msk.f32.gmra.mrb[2].mxu1 %vm59_vm3, %v512_v62  ;;  %v4956_v12 = vld [vmem:[%s6213_s2 + $0xe0] sm:$0xff]  ;;  %v3433_v13 = vld [vmem:[%s6213_s2 + $0xf0] sm:$0xf]  ;;  %v3970_v14 = vpack.c.bf16 %v3434_v6, %v4940_v4  ;;  %v3445_v15 = vld [vmem:[%s6215_s4 + $0x108] sm:$0xff]  ;;  %vm4598_vm5 = vmmov 0   ;;  %vm3265_vm6 = vcmask 408576  }
  0x21   :  { %3955 = vmatpush1.bf16.msk.msra.mxu0 %vm4682_vm2, %v3953_v63  ;;  %3965 = vmatpush1.bf16.msk.msra.mxu1 %vm4682_vm2, %v3953_v63  ;;  %v3447_v17 = vld [vmem:[%s6215_s4 + $0x118] sm:$0xff]  ;;  %v3973_v18 = vpack.c.bf16 %v3433_v13, %v4956_v12  ;;  %v3444_v25 = vld [vmem:[%s6215_s4 + $0x100] sm:$0xff]  ;;  %v3446_v26 = vld [vmem:[%s6215_s4 + $0x110] sm:$0xff]  ;;  %vm3343_vm7 = vcmask 74752  }
  0x22   :  { %679 = vmatprep.mubr.f32.mxu0 %v4594_v7  ;;  %760 = vmatprep.mubr.f32.mxu1 %v4594_v7  ;;  %v3584_v20 = vld [vmem:[%s6213_s2 + $0xb8] sm:$0xf]  ;;  %v3583_v28 = vld [vmem:[%s6213_s2 + $0xb0] sm:$0xf]  ;;  %v3449_v31 = vld [vmem:[%s6215_s4 + $0x128] sm:$0xff] }
  0x23   :  { %3967 = vmatprep.subr.bf16.mxu0 %v4932_v2  ;;  %3977 = vmatprep.subr.bf16.mxu1 %v4932_v2  ;;  %v4150_v27 = vpack.c.bf16 %v3584_v20, %v4672_v5  ;;  %v3451_v32 = vld [vmem:[%s6215_s4 + $0x138] sm:$0xff]  ;;  %v3448_v5 = vld [vmem:[%s6215_s4 + $0x120] sm:$0xff]  ;;  %v3450_v33 = vld [vmem:[%s6215_s4 + $0x130] sm:$0xff]  ;;  %v4153_v36 = vpack.c.bf16 %v3583_v28, %v4689_v11 }
  0x24   :  { %3421 = vmatmul.mubr.msk.f32.vlgmr.msra.gmra.mrb[0].mxu0 %vm59_vm3, %v4811_v38  ;;  %3425 = vmatmul.mubr.msk.f32.vlgmr.msra.gmra.mrb[0].mxu1 %vm59_vm3, %v4732_v21  ;;  %v4986_v21 = vpack.c.bf16 %v3447_v17, %v3445_v15  ;;  %v3455_v37 = vld [vmem:[%s6215_s4 + $0x158] sm:$0xff]  ;;  %v5040_v38 = vpack.c.bf16 %v3451_v32, %v3449_v31  ;;  %v5046_v11 = vpack.c.bf16 %v3450_v33, %v3448_v5  ;;  %v3452_v43 = vld [vmem:[%s6215_s4 + $0x140] sm:$0xff]  ;;  %v3454_v44 = vld [vmem:[%s6215_s4 + $0x150] sm:$0xff] }
  0x25   :  { %3969 = vmatpush1.bf16.msra.mxu0 %v4949_v9  ;;  %3979 = vmatpush1.bf16.msra.mxu1 %v4949_v9  ;;  %v1537_v41 = vld [vmem:[%s6213_s2 + $0x38] sm:$0xf]  ;;  %v5075_v47 = vpack.c.bf16 %v3454_v44, %v3452_v43  ;;  %v3573_v49 = vld [vmem:[%s6211_s0 + $0x10] sm:$0xff]  ;;  %v3457_v62 = vld [vmem:[%s6215_s4 + $0x168] sm:$0xff] }
  0x26   :  { %685 = vmatprep.mubr.f32.mxu0 %v4594_v7  ;;  %766 = vmatprep.mubr.f32.mxu1 %v4594_v7  ;;  %v4160_v45 = vpack.c.bf16 %v1537_v41, %v4720_v19  ;;  %v5086_v19 = vld [vmem:[%s6211_s0 + $0x19] sm:$0xf]  ;;  %v3631_v59 = vld [vmem:[%s6213_s2 + $0x70] sm:$0xf]  ;;  %v3456_v0 = vld [vmem:[%s6215_s4 + $0x160] sm:$0xff] }
  0x27   :  { %3972 = vmatprep.subr.msk.bf16.mxu0 %vm4682_vm2, %v3970_v14  ;;  %3982 = vmatprep.subr.msk.bf16.mxu1 %vm4682_vm2, %v3970_v14  ;;  %v3612_v52 = vld [vmem:[%s6213_s2 + $0x138] sm:$0xf]  ;;  %v3458_v1 = vld [vmem:[%s6215_s4 + $0x170] sm:$0xff]  ;;  %v3465_v15 = vld [vmem:[%s6215_s4 + $0x1a8] sm:$0xff] }
  0x28   :  { %3422 = vmatmul.mubr.msk.f32.gmra.mrb[2].mxu0 %vm59_vm3, %v4845_v46  ;;  %3426 = vmatmul.mubr.msk.f32.gmra.mrb[2].mxu1 %vm59_vm3, %v4767_v29  ;;  %v5010_v29 = vpack.c.bf16 %v3446_v26, %v3444_v25  ;;  %v1536_v46 = vld [vmem:[%s6213_s2 + $0x30] sm:$0xf]  ;;  %v3576_v54 = vld [vmem:[%s6212_s1 + $0x18] sm:$0xf]  ;;  %v3464_v20 = vld [vmem:[%s6215_s4 + $0x1a0] sm:$0xff] }
  0x29   :  { %3975 = vmatpush1.bf16.msk.msra.mxu0 %vm4682_vm2, %v3973_v18  ;;  %3985 = vmatpush1.bf16.msk.msra.mxu1 %vm4682_vm2, %v3973_v18  ;;  %v4163_v48 = vpack.c.bf16 %v1536_v46, %v4746_v24  ;;  %v3574_v24 = vld [vmem:[%s6211_s0 + $0x18] sm:$0xf]  ;;  %v3462_v13 = vld [vmem:[%s6215_s4 + $0x190] sm:$0xff]  ;;  %v3469_v26 = vld [vmem:[%s6215_s4 + $0x1c8] sm:$0xff] }
  0x2a   :  { %856 = vmatprep.mubr.f32.mxu0 %v4594_v7  ;;  %937 = vmatprep.mubr.f32.mxu1 %v4594_v7  ;;  %v3632_v58 = vld [vmem:[%s6213_s2 + $0x78] sm:$0xf]  ;;  %v3470_v31 = vld [vmem:[%s6215_s4 + $0x1d0] sm:$0xff]  ;;  %v3473_v5 = vld [vmem:[%s6215_s4 + $0x1e8] sm:$0xff] }
  0x2b   :  { %4147 = vmatprep.subr.bf16.mxu1 %v4664_v3  ;;  %3987 = vmatprep.subr.bf16.mxu0 %v4986_v21  ;;  %v3620_v60 = vld [vmem:[%s6212_s1 + $0x1a] sm:$0xf] }
  0x2c   :  { %3437 = vmatmul.mubr.msk.f32.vlgmr.msra.gmra.mrb[0].mxu0 %vm59_vm3, %v4737_v22  ;;  %3441 = vmatmul.mubr.msk.f32.vlgmr.msra.gmra.mrb[0].mxu1 %vm59_vm3, %v4880_v53  ;;  %v3453_v22 = vld [vmem:[%s6215_s4 + $0x148] sm:$0xff]  ;;  %v3611_v53 = vld [vmem:[%s6213_s2 + $0x130] sm:$0xf]  ;;  %v3459_v63 = vld [vmem:[%s6215_s4 + $0x178] sm:$0xff] }
  0x2d   :  { %4149 = vmatpush1.bf16.msra.mxu1 %v4679_v8  ;;  %862 = vmatprep.mubr.f32.mxu0 %v4594_v7  ;;  %v5052_v42 = vpack.c.bf16 %v3455_v37, %v3453_v22  ;;  %v4193_v57 = vpack.c.bf16 %v3611_v53, %v4820_v40  ;;  %v3614_v40 = vld [vmem:[%s6211_s0 + $0x1a] sm:$0xf]  ;;  %v3998_v10 = vpack.c.bf16 %v3459_v63, %v3457_v62  ;;  %v3474_v37 = vld [vmem:[%s6215_s4 + $0x1f0] sm:$0xff] }
  0x2e   :  { %943 = vmatprep.mubr.f32.mxu1 %v4594_v7  ;;  %4152 = vmatprep.subr.msk.bf16.mxu1 %vm4682_vm2, %v4150_v27  ;;  %v3463_v6 = vld [vmem:[%s6215_s4 + $0x198] sm:$0xff] }
  0x2f   :  { %3989 = vmatpush1.bf16.msra.mxu0 %v5010_v29  ;;  %v3467_v17 = vld [vmem:[%s6215_s4 + $0x1b8] sm:$0xff] }
  0x30   :  { %3438 = vmatmul.mubr.msk.f32.gmra.mrb[2].mxu0 %vm59_vm3, %v4772_v30  ;;  %3442 = vmatmul.mubr.msk.f32.gmra.mrb[2].mxu1 %vm59_vm3, %v4914_v61  ;;  %v5066_v30 = vld [vmem:[%s6211_s0 + $0x11] sm:$0xff]  ;;  %v4213_v61 = vpack.c.bf16 %v3631_v59, %v4892_v56  ;;  %v4006_v18 = vpack.c.bf16 %v3467_v17, %v3465_v15 }
  0x31   :  { %4155 = vmatpush1.bf16.msk.msra.mxu1 %vm4682_vm2, %v4153_v36  ;;  %1630 = vmatprep.mubr.f32.mxu1 %v4594_v7  ;;  %v3475_v33 = vld [vmem:[%s6215_s4 + $0x1f8] sm:$0xff] }
  0x32   :  { %4157 = vmatprep.subr.bf16.mxu1 %v4709_v16  ;;  %3991 = vmatprep.subr.bf16.mxu0 %v5040_v38  ;;  %v4014_v22 = vpack.c.bf16 %v3475_v33, %v3473_v5  ;;  %v977_v41 = vld [vmem:[%s6215_s4 + $0x18] sm:$0xff] }
  0x33   :  { %3993 = vmatpush1.bf16.msra.mxu0 %v5046_v11  ;;  %1104 = vmatprep.mubr.f32.mxu0 %v4594_v7 }
  0x34   :  { %3589 = vmatmul.mubr.msk.f32.vlgmr.msra.gmra.mrb[4].mxu1 %vm59_vm3, %v5066_v30  ;;  %3995 = vmatprep.subr.bf16.mxu0 %v5052_v42 }
  0x35   :  { %4159 = vmatpush1.bf16.msra.mxu1 %v4739_v23  ;;  %1636 = vmatprep.mubr.f32.mxu1 %v4594_v7 }
  0x36   :  { %4162 = vmatprep.subr.msk.bf16.mxu1 %vm4682_vm2, %v4160_v45 }
  0x37   :  { %3997 = vmatpush1.bf16.msra.mxu0 %v5075_v47 }
  0x38   :  { %3590 = vmatmul.mubr.msk.f32.gmra.mrb[6].mxu1 %vm59_vm3, %v5086_v19  ;;  %3999 = vmatprep.subr.bf16.mxu0 %v3998_v10 }
  0x39   :  { %4165 = vmatpush1.bf16.msk.msra.mxu1 %vm4682_vm2, %v4163_v48  ;;  %1719 = vmatprep.mubr.f32.mxu1 %v4594_v7 }
  0x3a   :  { %4167 = vmatprep.subr.bf16.mxu1 %v4664_v3  ;;  %v5116_v3 = vld [vmem:[%s6212_s1 + $0x11] sm:$0xff] }
  0x3c   :  { %3593 = vmatmul.mubr.msk.f32.vlgmr.msra.gmra.mrb[4].mxu1 %vm59_vm3, %v3573_v49 }
  0x3d   :  { %4169 = vmatpush1.bf16.msra.mxu1 %v4679_v8  ;;  %1725 = vmatprep.mubr.f32.mxu1 %v4594_v7  ;;  %v5126_v8 = vld [vmem:[%s6212_s1 + $0x19] sm:$0xf] }
  0x3e   :  { %4172 = vmatprep.subr.msk.bf16.mxu1 %vm4682_vm2, %v4150_v27  ;;  %v3471_v27 = vld [vmem:[%s6215_s4 + $0x1d8] sm:$0xff] }
  0x3f   :  { %v4010_v28 = vpack.c.bf16 %v3471_v27, %v3469_v26 }
  0x40   :  { %3594 = vmatmul.mubr.msk.f32.gmra.mrb[6].mxu1 %vm59_vm3, %v3574_v24 }
  0x41   :  { %4175 = vmatpush1.bf16.msk.msra.mxu1 %vm4682_vm2, %v4153_v36  ;;  %1804 = vmatprep.mubr.f32.mxu1 %v4594_v7  ;;  %v3472_v36 = vld [vmem:[%s6215_s4 + $0x1e0] sm:$0xff] }
  0x42   :  { %4177 = vmatprep.subr.bf16.mxu1 %v4709_v16  ;;  %v3575_v16 = vld [vmem:[%s6212_s1 + $0x10] sm:$0xff] }
  0x44   :  { %3599 = vmatmul.mubr.msk.f32.vlgmr.msra.gmra.mrb[8].mxu1 %vm59_vm3, %v5116_v3 }
  0x45   :  { %4179 = vmatpush1.bf16.msra.mxu1 %v4739_v23  ;;  %1810 = vmatprep.mubr.f32.mxu1 %v4594_v7  ;;  %v4190_v23 = vpack.c.bf16 %v3612_v52, %v4796_v35  ;;  %v3613_v35 = vld [vmem:[%s6211_s0 + $0x12] sm:$0xff] }
  0x46   :  { %4182 = vmatprep.subr.msk.bf16.mxu1 %vm4682_vm2, %v4160_v45 }
  0x48   :  { %3600 = vmatmul.mubr.msk.f32.gmra.mrb[10].mxu1 %vm59_vm3, %v5126_v8 }
  0x49   :  { %4185 = vmatpush1.bf16.msk.msra.mxu1 %vm4682_vm2, %v4163_v48  ;;  %1887 = vmatprep.mubr.f32.mxu1 %v4594_v7 }
  0x4a   :  { %4187 = vmatprep.subr.bf16.mxu1 %v4787_v34 }
  0x4c   :  { %3603 = vmatmul.mubr.msk.f32.vlgmr.msra.gmra.mrb[8].mxu1 %vm59_vm3, %v3575_v16 }
  0x4d   :  { %4189 = vmatpush1.bf16.msra.mxu1 %v4813_v39  ;;  %1893 = vmatprep.mubr.f32.mxu1 %v4594_v7 }
  0x4e   :  { %4192 = vmatprep.subr.msk.bf16.mxu1 %vm4682_vm2, %v4190_v23 }
  0x50   :  { %3604 = vmatmul.mubr.msk.f32.gmra.mrb[10].mxu1 %vm59_vm3, %v3576_v54 }
  0x51   :  { %4195 = vmatpush1.bf16.msk.msra.mxu1 %vm4682_vm2, %v4193_v57  ;;  %1986 = vmatprep.mubr.f32.mxu1 %v4594_v7 }
  0x52   :  { %4197 = vmatprep.subr.bf16.mxu1 %v4787_v34  ;;  %v3619_v34 = vld [vmem:[%s6212_s1 + $0x12] sm:$0xff] }
  0x54   :  { %3617 = vmatmul.mubr.msk.f32.vlgmr.msra.gmra.mrb[4].mxu1 %vm59_vm3, %v3613_v35 }
  0x55   :  { %4199 = vmatpush1.bf16.msra.mxu1 %v4813_v39  ;;  %1992 = vmatprep.mubr.f32.mxu1 %v4594_v7  ;;  %v4210_v39 = vpack.c.bf16 %v3632_v58, %v4868_v51  ;;  %v3648_v51 = vld [vmem:[%s6213_s2 + $0xf8] sm:$0xf]  ;;  %v976_v58 = vld [vmem:[%s6215_s4 + $0x10] sm:$0xff] }
  0x56   :  { %4202 = vmatprep.subr.msk.bf16.mxu1 %vm4682_vm2, %v4190_v23 }
  0x58   :  { %3618 = vmatmul.mubr.msk.f32.gmra.mrb[6].mxu1 %vm59_vm3, %v3614_v40 }
  0x59   :  { %4205 = vmatpush1.bf16.msk.msra.mxu1 %vm4682_vm2, %v4193_v57  ;;  %2075 = vmatprep.mubr.f32.mxu1 %v4594_v7 }
  0x5a   :  { %4207 = vmatprep.subr.bf16.mxu1 %v4860_v50 }
  0x5c   :  { %3623 = vmatmul.mubr.msk.f32.vlgmr.msra.gmra.mrb[8].mxu1 %vm59_vm3, %v3619_v34  ;;  %v979_v34 = vld [vmem:[%s6215_s4 + $0x28] sm:$0xff] }
  0x5d   :  { %4209 = vmatpush1.bf16.msra.mxu1 %v4885_v55  ;;  %2081 = vmatprep.mubr.f32.mxu1 %v4594_v7 }
  0x5e   :  { %4212 = vmatprep.subr.msk.bf16.mxu1 %vm4682_vm2, %v4210_v39 }
  0x60   :  { %3624 = vmatmul.mubr.msk.f32.gmra.mrb[10].mxu1 %vm59_vm3, %v3620_v60 }
  0x61   :  { %4215 = vmatpush1.bf16.msk.msra.mxu1 %vm4682_vm2, %v4213_v61  ;;  %2170 = vmatprep.mubr.f32.mxu1 %v4594_v7 }
  0x62   :  { %4217 = vmatprep.subr.bf16.mxu1 %v4860_v50  ;;  %v4230_v50 = vpack.c.bf16 %v3648_v51, %v4940_v4  ;;  %v3461_v4 = vld [vmem:[%s6215_s4 + $0x188] sm:$0xff]  ;;  %v980_v51 = vld [vmem:[%s6215_s4 + $0x30] sm:$0xff] }
  0x64   :  { %3635 = vmatmul.mubr.msk.f32.vlgmr.msra.gmra.mrb[4].mxu1 %vm59_vm3, %v3575_v16 }
  0x65   :  { %4219 = vmatpush1.bf16.msra.mxu1 %v4885_v55  ;;  %2176 = vmatprep.mubr.f32.mxu1 %v4594_v7  ;;  %v3647_v55 = vld [vmem:[%s6213_s2 + $0xf0] sm:$0xf] }
  0x66   :  { %4222 = vmatprep.subr.msk.bf16.mxu1 %vm4682_vm2, %v4210_v39  ;;  %v4233_v56 = vpack.c.bf16 %v3647_v55, %v4956_v12  ;;  %v3460_v12 = vld [vmem:[%s6215_s4 + $0x180] sm:$0xff]  ;;  %v981_v39 = vld [vmem:[%s6215_s4 + $0x38] sm:$0xff]  ;;  %v983_v55 = vld [vmem:[%s6215_s4 + $0x48] sm:$0xff] }
  0x67   :  { %v4004_v14 = vpack.c.bf16 %v3462_v13, %v3460_v12  ;;  %v5343_v60 = vpack.c.bf16 %v981_v39, %v979_v34  ;;  %v988_v12 = vld [vmem:[%s6215_s4 + $0x70] sm:$0xff]  ;;  %v991_v13 = vld [vmem:[%s6215_s4 + $0x88] sm:$0xff] }
  0x68   :  { %3636 = vmatmul.mubr.msk.f32.gmra.mrb[6].mxu1 %vm59_vm3, %v3576_v54  ;;  %v3486_v34 = vld [vmem:[%s6215_s4 + $0x250] sm:$0xff] }
  0x69   :  { %4225 = vmatpush1.bf16.msk.msra.mxu1 %vm4682_vm2, %v4213_v61  ;;  %2251 = vmatprep.mubr.f32.mxu1 %v4594_v7  ;;  %v978_v61 = vld [vmem:[%s6215_s4 + $0x20] sm:$0xff] }
  0x6a   :  { %4227 = vmatprep.subr.bf16.mxu1 %v4932_v2  ;;  %v5358_v62 = vpack.c.bf16 %v980_v51, %v978_v61  ;;  %v3488_v51 = vld [vmem:[%s6215_s4 + $0x260] sm:$0xff] }
  0x6c   :  { %3639 = vmatmul.mubr.msk.f32.vlgmr.msra.gmra.mrb[8].mxu1 %vm59_vm3, %v5066_v30 }
  0x6d   :  { %4229 = vmatpush1.bf16.msra.mxu1 %v4949_v9  ;;  %2257 = vmatprep.mubr.f32.mxu1 %v4594_v7 }
  0x6e   :  { %4232 = vmatprep.subr.msk.bf16.mxu1 %vm4682_vm2, %v4230_v50 }
  0x70   :  { %3640 = vmatmul.mubr.msk.f32.gmra.mrb[10].mxu1 %vm59_vm3, %v5086_v19  ;;  %v5320_v19 = vld [vmem:[%s6214_s3] ss:$0 sm:$0xff] }
  0x71   :  { %4235 = vmatpush1.bf16.msk.msra.mxu1 %vm4682_vm2, %v4233_v56  ;;  %2346 = vmatprep.mubr.f32.mxu1 %v4594_v7 }
  0x72   :  { %4237 = vmatprep.subr.bf16.mxu1 %v4932_v2  ;;  %v4000_v2 = vpack.c.bf16 %v3458_v1, %v3456_v0  ;;  %v984_v0 = vld [vmem:[%s6215_s4 + $0x50] sm:$0xff]  ;;  %v987_v1 = vld [vmem:[%s6215_s4 + $0x68] sm:$0xff] }
  0x74   :  { %3651 = vmatmul.mubr.msk.f32.vlgmr.msra.gmra.mrb[4].mxu1 %vm59_vm3, %v5116_v3  ;;  %4001 = vmatpush1.bf16.msra.mxu0 %v4000_v2 }
  0x75   :  { %4239 = vmatpush1.bf16.msra.mxu1 %v4949_v9  ;;  %2352 = vmatprep.mubr.f32.mxu1 %v4594_v7  ;;  %v4002_v9 = vpack.c.bf16 %v3463_v6, %v3461_v4 }
  0x76   :  { %4242 = vmatprep.subr.msk.bf16.mxu1 %vm4682_vm2, %v4230_v50 }
  0x77   :  { %4003 = vmatprep.subr.bf16.mxu0 %v4002_v9 }
  0x78   :  { %3652 = vmatmul.mubr.msk.f32.gmra.mrb[6].mxu1 %vm59_vm3, %v5126_v8  ;;  %4005 = vmatpush1.bf16.msra.mxu0 %v4004_v14 }
  0x79   :  { %4245 = vmatpush1.bf16.msk.msra.mxu1 %vm4682_vm2, %v4233_v56  ;;  %2427 = vmatprep.mubr.f32.mxu1 %v4594_v7  ;;  %v985_v56 = vld [vmem:[%s6215_s4 + $0x58] sm:$0xff] }
  0x7a   :  { %4247 = vmatprep.subr.bf16.mxu1 %v4986_v21  ;;  %v3466_v21 = vld [vmem:[%s6215_s4 + $0x1b0] sm:$0xff]  ;;  %4007 = vmatprep.subr.bf16.mxu0 %v4006_v18  ;;  %v5362_v63 = vpack.c.bf16 %v985_v56, %v983_v55  ;;  %v3493_v55 = vld [vmem:[%s6215_s4 + $0x288] sm:$0xff]  ;;  %v3495_v56 = vld [vmem:[%s6215_s4 + $0x298] sm:$0xff] }
  0x7b   :  { %v4008_v25 = vpack.c.bf16 %v3466_v21, %v3464_v20  ;;  %v992_v20 = vld [vmem:[%s6215_s4 + $0x90] sm:$0xff]  ;;  %v995_v21 = vld [vmem:[%s6215_s4 + $0xa8] sm:$0xff] }
  0x7c   :  { %3655 = vmatmul.mubr.msk.f32.vlgmr.msra.gmra.mrb[8].mxu1 %vm59_vm3, %v3613_v35 }
  0x7d   :  { %2433 = vmatprep.mubr.f32.mxu1 %v4594_v7  ;;  %4249 = vmatpush1.bf16.msra.mxu1 %v5010_v29  ;;  %v3468_v29 = vld [vmem:[%s6215_s4 + $0x1c0] sm:$0xff] }
  0x7e   :  { %4251 = vmatprep.subr.bf16.mxu1 %v5040_v38  ;;  %4009 = vmatpush1.bf16.msra.mxu0 %v4008_v25  ;;  %v4012_v32 = vpack.c.bf16 %v3470_v31, %v3468_v29  ;;  %v975_v38 = vld [vmem:[%s6215_s4 + $0x8] sm:$0xff]  ;;  %v996_v29 = vld [vmem:[%s6215_s4 + $0xb0] sm:$0xff] }
  0x7f   :  { %4011 = vmatprep.subr.bf16.mxu0 %v4010_v28  ;;  %v999_v31 = vld [vmem:[%s6215_s4 + $0xc8] sm:$0xff] }
  0x80   :  { %3656 = vmatmul.mubr.msk.f32.gmra.mrb[10].mxu1 %vm59_vm3, %v3614_v40  ;;  %v974_v40 = vld [vmem:[%s6215_s4] sm:$0xff] }
  0x81   :  { %4253 = vmatpush1.bf16.msra.mxu1 %v5046_v11  ;;  %2593 = vmatprep.mubr.f32.mxu1 %v4594_v7  ;;  %v4016_v11 = vpack.c.bf16 %v3474_v37, %v3472_v36  ;;  %v5341_v59 = vpack.c.bf16 %v976_v58, %v974_v40  ;;  %v998_v36 = vld [vmem:[%s6215_s4 + $0xc0] sm:$0xff]  ;;  %v1003_v37 = vld [vmem:[%s6215_s4 + $0xe8] sm:$0xff] }
  0x82   :  { %4255 = vmatprep.subr.bf16.mxu1 %v5052_v42  ;;  %4013 = vmatpush1.bf16.msra.mxu0 %v4012_v32  ;;  %v4018_v42 = vpack.c.bf16 %v977_v41, %v975_v38  ;;  %v1005_v38 = vld [vmem:[%s6215_s4 + $0xf8] sm:$0xff]  ;;  %v3484_v58 = vld [vmem:[%s6215_s4 + $0x240] sm:$0xff] }
  0x83   :  { %4015 = vmatprep.subr.bf16.mxu0 %v4014_v22  ;;  %v5524_v39 = vpack.c.bf16 %v3486_v34, %v3484_v58  ;;  %v3510_v58 = vld [vmem:[%s6215_s4 + $0x310] sm:$0xff] }
  0x85   :  { %4257 = vmatpush1.bf16.msra.mxu1 %v5075_v47 }
  0x86   :  { %4259 = vmatprep.subr.bf16.mxu1 %v3998_v10  ;;  %4017 = vmatpush1.bf16.msra.mxu0 %v4016_v11  ;;  %v982_v10 = vld [vmem:[%s6215_s4 + $0x40] sm:$0xff] }
  0x87   :  { %4019 = vmatprep.subr.bf16.mxu0 %v4018_v42  ;;  %v5377_v4 = vpack.c.bf16 %v984_v0, %v982_v10  ;;  %v5545_v0 = vpack.c.bf16 %v3495_v56, %v3493_v55 }
  0x89   :  { %4261 = vmatpush1.bf16.msra.mxu1 %v4000_v2  ;;  %v989_v2 = vld [vmem:[%s6215_s4 + $0x78] sm:$0xff] }
  0x8a   :  { %4263 = vmatprep.subr.bf16.mxu1 %v4002_v9  ;;  %v5380_v6 = vpack.c.bf16 %v989_v2, %v987_v1  ;;  %v986_v9 = vld [vmem:[%s6215_s4 + $0x60] sm:$0xff]  ;;  %v3494_v2 = vld [vmem:[%s6215_s4 + $0x290] sm:$0xff] }
  0x8b   :  { %v5395_v15 = vpack.c.bf16 %v988_v12, %v986_v9  ;;  %v3492_v1 = vld [vmem:[%s6215_s4 + $0x280] sm:$0xff]  ;;  %v3497_v9 = vld [vmem:[%s6215_s4 + $0x2a8] sm:$0xff]  ;;  %v3499_v12 = vld [vmem:[%s6215_s4 + $0x2b8] sm:$0xff] }
  0x8d   :  { %4265 = vmatpush1.bf16.msra.mxu1 %v4004_v14  ;;  %v993_v14 = vld [vmem:[%s6215_s4 + $0x98] sm:$0xff] }
  0x8e   :  { %4267 = vmatprep.subr.bf16.mxu1 %v4006_v18  ;;  %v5398_v17 = vpack.c.bf16 %v993_v14, %v991_v13  ;;  %v990_v18 = vld [vmem:[%s6215_s4 + $0x80] sm:$0xff]  ;;  %v5560_v13 = vpack.c.bf16 %v3494_v2, %v3492_v1  ;;  %v5563_v14 = vpack.c.bf16 %v3499_v12, %v3497_v9  ;;  %v3514_v12 = vld [vmem:[%s6215_s4 + $0x330] sm:$0xff] }
  0x8f   :  { %v5413_v26 = vpack.c.bf16 %v992_v20, %v990_v18  ;;  %v3496_v18 = vld [vmem:[%s6215_s4 + $0x2a0] sm:$0xff]  ;;  %v3498_v20 = vld [vmem:[%s6215_s4 + $0x2b0] sm:$0xff] }
  0x90   :  { %v3512_v9 = vld [vmem:[%s6215_s4 + $0x320] sm:$0xff] }
  0x91   :  { %4269 = vmatpush1.bf16.msra.mxu1 %v4008_v25  ;;  %v997_v25 = vld [vmem:[%s6215_s4 + $0xb8] sm:$0xff] }
  0x92   :  { %4271 = vmatprep.subr.bf16.mxu1 %v4010_v28  ;;  %v5416_v27 = vpack.c.bf16 %v997_v25, %v995_v21  ;;  %v994_v28 = vld [vmem:[%s6215_s4 + $0xa0] sm:$0xff]  ;;  %v3501_v21 = vld [vmem:[%s6215_s4 + $0x2c8] sm:$0xff]  ;;  %v3503_v25 = vld [vmem:[%s6215_s4 + $0x2d8] sm:$0xff] }
  0x93   :  { %v5431_v5 = vpack.c.bf16 %v996_v29, %v994_v28  ;;  %v5578_v28 = vpack.c.bf16 %v3498_v20, %v3496_v18 }
  0x95   :  { %4273 = vmatpush1.bf16.msra.mxu1 %v4012_v32  ;;  %v1001_v32 = vld [vmem:[%s6215_s4 + $0xd8] sm:$0xff] }
  0x96   :  { %4275 = vmatprep.subr.bf16.mxu1 %v4014_v22  ;;  %v5434_v33 = vpack.c.bf16 %v1001_v32, %v999_v31  ;;  %v1000_v22 = vld [vmem:[%s6215_s4 + $0xd0] sm:$0xff]  ;;  %v5581_v31 = vpack.c.bf16 %v3503_v25, %v3501_v21  ;;  %v3500_v32 = vld [vmem:[%s6215_s4 + $0x2c0] sm:$0xff]  ;;  %v3517_v25 = vld [vmem:[%s6215_s4 + $0x348] sm:$0xff] }
  0x97   :  { %v5449_v41 = vpack.c.bf16 %v1000_v22, %v998_v36  ;;  %v3502_v36 = vld [vmem:[%s6215_s4 + $0x2d0] sm:$0xff] }
  0x99   :  { %4277 = vmatpush1.bf16.msra.mxu1 %v4016_v11  ;;  %v5452_v11 = vpack.c.bf16 %v1005_v38, %v1003_v37  ;;  %v3505_v37 = vld [vmem:[%s6215_s4 + $0x2e8] sm:$0xff]  ;;  %v3507_v38 = vld [vmem:[%s6215_s4 + $0x2f8] sm:$0xff] }
  0x9a   :  { %4279 = vmatprep.subr.bf16.mxu1 %v4018_v42  ;;  %v1002_v42 = vld [vmem:[%s6215_s4 + $0xe0] sm:$0xff] }
  0xff   :  { %v858_v43 = vpop.f32.mrb[0].mxu0  ;;  %v939_v44 = vpop.f32.mrb[0].mxu1 }
 0x100   :  { %v954_v30 = vmax.f32 %v858_v43, %v939_v44  ;;  %v860_v45 = vpop.f32.mrb[1].mxu0  ;;  %v941_v46 = vpop.f32.mrb[1].mxu1  ;;  %v1004_v43 = vld [vmem:[%s6215_s4 + $0xf0] sm:$0xff]  ;;  %v3477_v44 = vld [vmem:[%s6215_s4 + $0x208] sm:$0xff] }
 0x101   :  { %v955_v47 = vmax.f32 %v860_v45, %v941_v46  ;;  %v5467_v45 = vpack.c.bf16 %v1004_v43, %v1002_v42  ;;  %v5596_v42 = vpack.c.bf16 %v3502_v36, %v3500_v32 }
 0x103   :  { %v958_v48 = vmax.f32 %v954_v30, %v955_v47  ;;  %v864_v49 = vpop.f32.mrb[2].mxu0  ;;  %v945_v24 = vpop.f32.mrb[2].mxu1  ;;  %v3479_v30 = vld [vmem:[%s6215_s4 + $0x218] sm:$0xff]  ;;  %v3476_v47 = vld [vmem:[%s6215_s4 + $0x200] sm:$0xff] }
 0x104   :  { %v956_v3 = vmax.f32 %v864_v49, %v945_v24  ;;  %v866_v8 = vpop.f32.mrb[3].mxu0  ;;  %v947_v52 = vpop.f32.mrb[3].mxu1  ;;  %v5470_v46 = vpack.c.bf16 %v3479_v30, %v3477_v44  ;;  %v3481_v49 = vld [vmem:[%s6215_s4 + $0x228] sm:$0xff]  ;;  %v3483_v24 = vld [vmem:[%s6215_s4 + $0x238] sm:$0xff]  ;;  %v5599_v44 = vpack.c.bf16 %v3507_v38, %v3505_v37  ;;  %v3504_v30 = vld [vmem:[%s6215_s4 + $0x2e0] sm:$0xff] }
 0x105   :  { %v5323_v16 = vadd.f32 %v5320_v19, %v958_v48  ;;  %v957_v23 = vmax.f32 %v866_v8, %v947_v52  ;;  %v3478_v48 = vld [vmem:[%s6215_s4 + $0x210] sm:$0xff]  ;;  %v5488_v8 = vpack.c.bf16 %v3483_v24, %v3481_v49  ;;  %v3480_v52 = vld [vmem:[%s6215_s4 + $0x220] sm:$0xff]  ;;  %v3509_v49 = vld [vmem:[%s6215_s4 + $0x308] sm:$0xff] }
 0x106   :  { %v3511_v24 = vld [vmem:[%s6215_s4 + $0x318] sm:$0xff] }
 0x107   :  { %v969_v53 = vmax.f32 %v5323_v16, 0.0  ;;  %v959_v54 = vmax.f32 %v956_v3, %v957_v23  ;;  %v5485_v3 = vpack.c.bf16 %v3478_v48, %v3476_v47  ;;  %v3482_v23 = vld [vmem:[%s6215_s4 + $0x230] sm:$0xff]  ;;  %v3489_v16 = vld [vmem:[%s6215_s4 + $0x268] sm:$0xff] }
 0x108   :  { %v3506_v47 = vld [vmem:[%s6215_s4 + $0x2f0] sm:$0xff] }
 0x109   :  { %971 = vst [vmem:[#allocation2] sm:$0xff] %v969_v53  ;;  %v968_v57 = vadd.f32 %v5320_v19, %v959_v54  ;;  %v3485_v54 = vld [vmem:[%s6215_s4 + $0x248] sm:$0xff] }
 0x10b   :  { %v970_v35 = vmax.f32 %v968_v57, 0.0  ;;  %v3487_v57 = vld [vmem:[%s6215_s4 + $0x258] sm:$0xff] }
 0x10c   :  { %v5509_v40 = vpack.c.bf16 %v3487_v57, %v3485_v54  ;;  %v5617_v54 = vpack.c.bf16 %v3511_v24, %v3509_v49  ;;  %v3508_v57 = vld [vmem:[%s6215_s4 + $0x300] sm:$0xff] }
 0x10d   :  { %972 = vst [vmem:[#allocation2 + $0x8] sm:$0xf] %v970_v35  ;;  %v5505_v35 = vpack.c.bf16 %v3482_v23, %v3480_v52  ;;  %v5614_v52 = vpack.c.bf16 %v3506_v47, %v3504_v30  ;;  %v5632_v55 = vpack.c.bf16 %v3510_v58, %v3508_v57  ;;  %v3516_v30 = vld [vmem:[%s6215_s4 + $0x340] sm:$0xff]  ;;  %v3518_v47 = vld [vmem:[%s6215_s4 + $0x350] sm:$0xff] }
 0x10e   :  { %v5680_v58 = vpack.c.bf16 %v3518_v47, %v3516_v30  ;;  %v3533_v30 = vld [vmem:[%s6215_s4 + $0x3c8] sm:$0xff]  ;;  %v3535_v47 = vld [vmem:[%s6215_s4 + $0x3d8] sm:$0xff] }
 0x114   :  { %v1006_v50 = vld [vmem:[#allocation2 + $0x1] sm:$0xff] }
 0x115   :  { %1105 = vmatmul.mubr.f32.vlgmr.msra.gmra.mrb[4].mxu0 %v1006_v50  ;;  %v3490_v50 = vld [vmem:[%s6215_s4 + $0x270] sm:$0xff]  ;;  %v1182_v20 = vld [vmem:[#allocation2 + $0x2] sm:$0xff] }
 0x116   :  { %4021 = vmatpush1.bf16.msra.mxu0 %v5341_v59  ;;  %1175 = vmatprep.mubr.f32.mxu0 %v4594_v7  ;;  %v5542_v10 = vpack.c.bf16 %v3490_v50, %v3488_v51  ;;  %v3515_v51 = vld [vmem:[%s6215_s4 + $0x338] sm:$0xff]  ;;  %v5669_v49 = vld [vmem:[#allocation2 + $0x3] sm:$0xff] }
 0x117   :  { %4023 = vmatprep.subr.bf16.mxu0 %v5343_v60  ;;  %v5671_v24 = vld [vmem:[#allocation2 + $0x4] sm:$0xff] }
 0x11a   :  { %4025 = vmatpush1.bf16.msra.mxu0 %v5358_v62 }
 0x11b   :  { %4027 = vmatprep.subr.bf16.mxu0 %v5362_v63 }
 0x11e   :  { %4029 = vmatpush1.bf16.msra.mxu0 %v5377_v4 }
 0x11f   :  { %4031 = vmatprep.subr.bf16.mxu0 %v5380_v6 }
 0x122   :  { %4033 = vmatpush1.bf16.msra.mxu0 %v5395_v15 }
 0x123   :  { %4035 = vmatprep.subr.bf16.mxu0 %v5398_v17 }
 0x126   :  { %4037 = vmatpush1.bf16.msra.mxu0 %v5413_v26 }
 0x127   :  { %4039 = vmatprep.subr.bf16.mxu0 %v5416_v27 }
 0x12a   :  { %4041 = vmatpush1.bf16.msra.mxu0 %v5431_v5 }
 0x12b   :  { %4043 = vmatprep.subr.bf16.mxu0 %v5434_v33 }
 0x12e   :  { %4045 = vmatpush1.bf16.msra.mxu0 %v5449_v41 }
 0x12f   :  { %4047 = vmatprep.subr.bf16.mxu0 %v5452_v11 }
 0x132   :  { %4049 = vmatpush1.bf16.msra.mxu0 %v5467_v45 }
 0x133   :  { %4051 = vmatprep.subr.bf16.mxu0 %v5470_v46 }
 0x135   :  { %1176 = vmatmul.mubr.f32.vlgmr.msra.gmra.mrb[4].mxu0 %v969_v53  ;;  %v3491_v53 = vld [vmem:[%s6215_s4 + $0x278] sm:$0xff] }
 0x136   :  { %4053 = vmatpush1.bf16.msra.mxu0 %v5485_v3  ;;  %1280 = vmatprep.mubr.f32.mxu0 %v4594_v7  ;;  %v5527_v61 = vpack.c.bf16 %v3491_v53, %v3489_v16  ;;  %v3513_v53 = vld [vmem:[%s6215_s4 + $0x328] sm:$0xff] }
 0x137   :  { %4055 = vmatprep.subr.bf16.mxu0 %v5488_v8  ;;  %v5635_v2 = vpack.c.bf16 %v3515_v51, %v3513_v53  ;;  %v3520_v53 = vld [vmem:[%s6215_s4 + $0x360] sm:$0xff]  ;;  %v3522_v51 = vld [vmem:[%s6215_s4 + $0x370] sm:$0xff] }
 0x13a   :  { %4057 = vmatpush1.bf16.msra.mxu0 %v5505_v35 }
 0x13b   :  { %4059 = vmatprep.subr.bf16.mxu0 %v5509_v40 }
 0x13e   :  { %4061 = vmatpush1.bf16.msra.mxu0 %v5524_v39 }
 0x13f   :  { %4063 = vmatprep.subr.bf16.mxu0 %v5527_v61 }
 0x142   :  { %4065 = vmatpush1.bf16.msra.mxu0 %v5542_v10 }
 0x143   :  { %4067 = vmatprep.subr.bf16.mxu0 %v5545_v0 }
 0x146   :  { %4069 = vmatpush1.bf16.msra.mxu0 %v5560_v13 }
 0x147   :  { %v2348_v29 = vpop.f32.mrb[4].mxu1  ;;  %4071 = vmatprep.subr.bf16.mxu0 %v5563_v14 }
 0x148   :  { %v2350_v22 = vpop.f32.mrb[5].mxu1 }
 0x14a   :  { %4073 = vmatpush1.bf16.msra.mxu0 %v5578_v28 }
 0x14b   :  { %v2354_v43 = vpop.f32.mrb[6].mxu1  ;;  %4075 = vmatprep.subr.bf16.mxu0 %v5581_v31 }
 0x14c   :  { %v2356_v48 = vpop.f32.mrb[7].mxu1 }
 0x14e   :  { %4077 = vmatpush1.bf16.msra.mxu0 %v5596_v42 }
 0x14f   :  { %v2429_v23 = vpop.f32.mrb[8].mxu1  ;;  %4079 = vmatprep.subr.bf16.mxu0 %v5599_v44 }
 0x150   :  { %v2444_v34 = vmax.f32 %v2348_v29, %v2429_v23  ;;  %v2431_v16 = vpop.f32.mrb[9].mxu1  ;;  %v3519_v29 = vld [vmem:[%s6215_s4 + $0x358] sm:$0xff] }
 0x151   :  { %v2445_v50 = vmax.f32 %v2350_v22, %v2431_v16  ;;  %v5653_v22 = vpack.c.bf16 %v3514_v12, %v3512_v9  ;;  %v3523_v23 = vld [vmem:[%s6215_s4 + $0x378] sm:$0xff]  ;;  %v3524_v9 = vld [vmem:[%s6215_s4 + $0x380] sm:$0xff]  ;;  %v3526_v12 = vld [vmem:[%s6215_s4 + $0x390] sm:$0xff] }
 0x152   :  { %4081 = vmatpush1.bf16.msra.mxu0 %v5614_v52 }
 0x153   :  { %v2448_v56 = vmax.f32 %v2444_v34, %v2445_v50  ;;  %v2435_v1 = vpop.f32.mrb[10].mxu1  ;;  %4083 = vmatprep.subr.bf16.mxu0 %v5617_v54  ;;  %v3527_v50 = vld [vmem:[%s6215_s4 + $0x398] sm:$0xff] }
 0x154   :  { %v2446_v18 = vmax.f32 %v2354_v43, %v2435_v1  ;;  %v2437_v21 = vpop.f32.mrb[11].mxu1  ;;  %v5658_v43 = vpack.c.bf16 %v3519_v29, %v3517_v25  ;;  %v3528_v29 = vld [vmem:[%s6215_s4 + $0x3a0] sm:$0xff] }
 0x155   :  { %v5650_v32 = vadd.f32 %v5320_v19, %v2448_v56  ;;  %1281 = vmatmul.mubr.f32.vlgmr.msra.gmra.mrb[4].mxu0 %v1182_v20  ;;  %v2447_v36 = vmax.f32 %v2356_v48, %v2437_v21  ;;  %v3521_v48 = vld [vmem:[%s6215_s4 + $0x368] sm:$0xff]  ;;  %v5698_v56 = vpack.c.bf16 %v3522_v51, %v3520_v53  ;;  %v3531_v20 = vld [vmem:[%s6215_s4 + $0x3b8] sm:$0xff]  ;;  %v5716_v21 = vpack.c.bf16 %v3526_v12, %v3524_v9 }
 0x156   :  { %4085 = vmatpush1.bf16.msra.mxu0 %v5632_v55  ;;  %1387 = vmatprep.mubr.f32.mxu0 %v4594_v7  ;;  %v5683_v16 = vpack.c.bf16 %v3523_v23, %v3521_v48  ;;  %v5739_v23 = vpack.c.bf16 %v3535_v47, %v3533_v30  ;;  %v3539_v53 = vld [vmem:[%s6215_s4 + $0x3f8] sm:$0xff]  ;;  %v3546_v30 = vld [vmem:[%s6215_s4 + $0x430] sm:$0xff] }
 0x157   :  { %v2459_v37 = vmax.f32 %v5650_v32, 0.0  ;;  %v2449_v38 = vmax.f32 %v2446_v18, %v2447_v36  ;;  %4087 = vmatprep.subr.bf16.mxu0 %v5635_v2  ;;  %v3529_v18 = vld [vmem:[%s6215_s4 + $0x3a8] sm:$0xff]  ;;  %v3530_v36 = vld [vmem:[%s6215_s4 + $0x3b0] sm:$0xff]  ;;  %v3543_v9 = vld [vmem:[%s6215_s4 + $0x418] sm:$0xff] }
 0x158   :  { %v5719_v25 = vpack.c.bf16 %v3531_v20, %v3529_v18  ;;  %v5735_v48 = vpack.c.bf16 %v3530_v36, %v3528_v29  ;;  %v3540_v18 = vld [vmem:[%s6215_s4 + $0x400] sm:$0xff]  ;;  %v3542_v20 = vld [vmem:[%s6215_s4 + $0x410] sm:$0xff]  ;;  %v3547_v29 = vld [vmem:[%s6215_s4 + $0x438] sm:$0xff] }
 0x159   :  { %2461 = vst [vmem:[#allocation2] sm:$0xff] %v2459_v37  ;;  %v2458_v57 = vadd.f32 %v5320_v19, %v2449_v38  ;;  %v3525_v19 = vld [vmem:[%s6215_s4 + $0x388] sm:$0xff]  ;;  %v3551_v47 = vld [vmem:[%s6215_s4 + $0x458] sm:$0xff]  ;;  %v3566_v32 = vld [vmem:[%s6215_s4 + $0x4d0] sm:$0xff] }
 0x15a   :  { %4089 = vmatpush1.bf16.msra.mxu0 %v5653_v22  ;;  %v5701_v1 = vpack.c.bf16 %v3527_v50, %v3525_v19  ;;  %v3536_v19 = vld [vmem:[%s6215_s4 + $0x3e0] sm:$0xff]  ;;  %v3538_v50 = vld [vmem:[%s6215_s4 + $0x3f0] sm:$0xff] }
 0x15b   :  { %v2460_v34 = vmax.f32 %v2458_v57, 0.0  ;;  %4091 = vmatprep.subr.bf16.mxu0 %v5658_v43  ;;  %v3532_v57 = vld [vmem:[%s6215_s4 + $0x3c0] sm:$0xff] }
 0x15d   :  { %2462 = vst [vmem:[#allocation2 + $0x8] sm:$0xf] %v2460_v34  ;;  %v3534_v34 = vld [vmem:[%s6215_s4 + $0x3d0] sm:$0xff] }
 0x15e   :  { %4093 = vmatpush1.bf16.msra.mxu0 %v5680_v58 }
 0x15f   :  { %4095 = vmatprep.subr.bf16.mxu0 %v5683_v16 }
 0x162   :  { %4097 = vmatpush1.bf16.msra.mxu0 %v5698_v56 }
 0x163   :  { %4099 = vmatprep.subr.bf16.mxu0 %v5701_v1 }
 0x164   :  { %v2496_v38 = vld [vmem:[#allocation2 + $0x1] sm:$0xff] }
 0x165   :  { %2594 = vmatmul.mubr.f32.vlgmr.msra.gmra.mrb[12].mxu1 %v2496_v38  ;;  %v3544_v38 = vld [vmem:[%s6215_s4 + $0x420] sm:$0xff] }
 0x166   :  { %4101 = vmatpush1.bf16.msra.mxu0 %v5716_v21  ;;  %4281 = vmatpush1.bf16.msra.mxu1 %v5341_v59  ;;  %v3537_v59 = vld [vmem:[%s6215_s4 + $0x3e8] sm:$0xff] }
 0x167   :  { %4103 = vmatprep.subr.bf16.mxu0 %v5719_v25  ;;  %4283 = vmatprep.subr.bf16.mxu1 %v5343_v60  ;;  %v5756_v60 = vpack.c.bf16 %v3534_v34, %v3532_v57  ;;  %v5760_v51 = vpack.c.bf16 %v3539_v53, %v3537_v59  ;;  %v3548_v34 = vld [vmem:[%s6215_s4 + $0x440] sm:$0xff]  ;;  %v3555_v59 = vld [vmem:[%s6215_s4 + $0x478] sm:$0xff] }
 0x168   :  { %2664 = vmatprep.mubr.f32.mxu1 %v4594_v7 }
 0x16a   :  { %4105 = vmatpush1.bf16.msra.mxu0 %v5735_v48  ;;  %4285 = vmatpush1.bf16.msra.mxu1 %v5358_v62  ;;  %v3541_v62 = vld [vmem:[%s6215_s4 + $0x408] sm:$0xff] }
 0x16b   :  { %4107 = vmatprep.subr.bf16.mxu0 %v5739_v23  ;;  %4287 = vmatprep.subr.bf16.mxu1 %v5362_v63  ;;  %v5776_v63 = vpack.c.bf16 %v3538_v50, %v3536_v19  ;;  %v5780_v12 = vpack.c.bf16 %v3543_v9, %v3541_v62  ;;  %v3552_v19 = vld [vmem:[%s6215_s4 + $0x460] sm:$0xff]  ;;  %v3554_v50 = vld [vmem:[%s6215_s4 + $0x470] sm:$0xff]  ;;  %v3559_v62 = vld [vmem:[%s6215_s4 + $0x498] sm:$0xff] }
 0x16e   :  { %4109 = vmatpush1.bf16.msra.mxu0 %v5756_v60  ;;  %4289 = vmatpush1.bf16.msra.mxu1 %v5377_v4  ;;  %v3545_v4 = vld [vmem:[%s6215_s4 + $0x428] sm:$0xff] }
 0x16f   :  { %4111 = vmatprep.subr.bf16.mxu0 %v5760_v51  ;;  %4291 = vmatprep.subr.bf16.mxu1 %v5380_v6  ;;  %v5796_v6 = vpack.c.bf16 %v3542_v20, %v3540_v18  ;;  %v5800_v36 = vpack.c.bf16 %v3547_v29, %v3545_v4  ;;  %v3556_v18 = vld [vmem:[%s6215_s4 + $0x480] sm:$0xff]  ;;  %v3558_v20 = vld [vmem:[%s6215_s4 + $0x490] sm:$0xff]  ;;  %v3563_v4 = vld [vmem:[%s6215_s4 + $0x4b8] sm:$0xff] }
 0x172   :  { %4113 = vmatpush1.bf16.msra.mxu0 %v5776_v63  ;;  %4293 = vmatpush1.bf16.msra.mxu1 %v5395_v15  ;;  %v3549_v15 = vld [vmem:[%s6215_s4 + $0x448] sm:$0xff] }
 0x173   :  { %4115 = vmatprep.subr.bf16.mxu0 %v5780_v12  ;;  %4295 = vmatprep.subr.bf16.mxu1 %v5398_v17  ;;  %v5817_v17 = vpack.c.bf16 %v3546_v30, %v3544_v38  ;;  %v5821_v57 = vpack.c.bf16 %v3551_v47, %v3549_v15  ;;  %v3560_v38 = vld [vmem:[%s6215_s4 + $0x4a0] sm:$0xff]  ;;  %v3562_v30 = vld [vmem:[%s6215_s4 + $0x4b0] sm:$0xff]  ;;  %v3567_v15 = vld [vmem:[%s6215_s4 + $0x4d8] sm:$0xff] }
 0x175   :  { %1388 = vmatmul.mubr.f32.vlgmr.msra.gmra.mrb[4].mxu0 %v5669_v49  ;;  %v3550_v49 = vld [vmem:[%s6215_s4 + $0x450] sm:$0xff] }
 0x176   :  { %4117 = vmatpush1.bf16.msra.mxu0 %v5796_v6  ;;  %4297 = vmatpush1.bf16.msra.mxu1 %v5413_v26  ;;  %v3553_v26 = vld [vmem:[%s6215_s4 + $0x468] sm:$0xff] }
 0x177   :  { %4119 = vmatprep.subr.bf16.mxu0 %v5800_v36  ;;  %4299 = vmatprep.subr.bf16.mxu1 %v5416_v27  ;;  %v5838_v27 = vpack.c.bf16 %v3550_v49, %v3548_v34  ;;  %v5842_v53 = vpack.c.bf16 %v3555_v59, %v3553_v26  ;;  %v3564_v34 = vld [vmem:[%s6215_s4 + $0x4c0] sm:$0xff]  ;;  %v3570_v59 = vld [vmem:[%s6215_s4 + $0x4f0] sm:$0xff] }
 0x178   :  { %1494 = vmatprep.mubr.f32.mxu0 %v4594_v7  ;;  %v3568_v26 = vld [vmem:[%s6215_s4 + $0x4e0] sm:$0xff] }
 0x17a   :  { %4121 = vmatpush1.bf16.msra.mxu0 %v5817_v17  ;;  %4301 = vmatpush1.bf16.msra.mxu1 %v5431_v5  ;;  %v3557_v5 = vld [vmem:[%s6215_s4 + $0x488] sm:$0xff] }
 0x17b   :  { %4123 = vmatprep.subr.bf16.mxu0 %v5821_v57  ;;  %4303 = vmatprep.subr.bf16.mxu1 %v5434_v33  ;;  %v5858_v33 = vpack.c.bf16 %v3554_v50, %v3552_v19  ;;  %v5862_v9 = vpack.c.bf16 %v3559_v62, %v3557_v5  ;;  %v4144_v19 = vpack.c.bf16 %v3570_v59, %v3568_v26  ;;  %v3028_v50 = vld [vmem:[%s6217_s6 + $0x58] sm:$0xff]  ;;  %v3045_v5 = vld [vmem:[%s6217_s6 + $0xe0] sm:$0xff]  ;;  %v3046_v62 = vld [vmem:[%s6217_s6 + $0xe8] sm:$0xff] }
 0x17e   :  { %4125 = vmatpush1.bf16.msra.mxu0 %v5838_v27  ;;  %4305 = vmatpush1.bf16.msra.mxu1 %v5449_v41  ;;  %v3561_v41 = vld [vmem:[%s6215_s4 + $0x4a8] sm:$0xff] }
 0x17f   :  { %4127 = vmatprep.subr.bf16.mxu0 %v5842_v53  ;;  %4307 = vmatprep.subr.bf16.mxu1 %v5452_v11  ;;  %v5878_v11 = vpack.c.bf16 %v3558_v20, %v3556_v18  ;;  %v5882_v29 = vpack.c.bf16 %v3563_v4, %v3561_v41  ;;  %v3029_v18 = vld [vmem:[%s6217_s6 + $0x60] sm:$0xff]  ;;  %v3030_v20 = vld [vmem:[%s6217_s6 + $0x68] sm:$0xff]  ;;  %v3047_v41 = vld [vmem:[%s6217_s6 + $0xf0] sm:$0xff] }
 0x180   :  { %v3048_v4 = vld [vmem:[%s6217_s6 + $0xf8] sm:$0xff] }
 0x182   :  { %4129 = vmatpush1.bf16.msra.mxu0 %v5858_v33  ;;  %4309 = vmatpush1.bf16.msra.mxu1 %v5467_v45  ;;  %v3565_v45 = vld [vmem:[%s6215_s4 + $0x4c8] sm:$0xff] }
 0x183   :  { %4131 = vmatprep.subr.bf16.mxu0 %v5862_v9  ;;  %4311 = vmatprep.subr.bf16.mxu1 %v5470_v46  ;;  %v5900_v46 = vpack.c.bf16 %v3562_v30, %v3560_v38  ;;  %v5904_v47 = vpack.c.bf16 %v3567_v15, %v3565_v45  ;;  %v3031_v38 = vld [vmem:[%s6217_s6 + $0x70] sm:$0xff]  ;;  %v3032_v30 = vld [vmem:[%s6217_s6 + $0x78] sm:$0xff]  ;;  %v3065_v15 = vld [vmem:[%s6217_s6 + $0x180] sm:$0xff] }
 0x184   :  { %v4436_v45 = vpack.c.bf16 %v3032_v30, %v3031_v38 }
 0x185   :  { %2665 = vmatmul.mubr.f32.vlgmr.msra.gmra.mrb[12].mxu1 %v2459_v37  ;;  %v3571_v37 = vld [vmem:[%s6215_s4 + $0x4f8] sm:$0xff] }
 0x186   :  { %4133 = vmatpush1.bf16.msra.mxu0 %v5878_v11  ;;  %4313 = vmatpush1.bf16.msra.mxu1 %v5485_v3  ;;  %v3569_v3 = vld [vmem:[%s6215_s4 + $0x4e8] sm:$0xff] }
 0x187   :  { %4135 = vmatprep.subr.bf16.mxu0 %v5882_v29  ;;  %4315 = vmatprep.subr.bf16.mxu1 %v5488_v8  ;;  %v4140_v8 = vpack.c.bf16 %v3566_v32, %v3564_v34  ;;  %v4142_v49 = vpack.c.bf16 %v3571_v37, %v3569_v3  ;;  %v3572_v3 = vld [vmem:[%s6216_s5] ss:$0 sm:$0xff] }
 0x188   :  { %2768 = vmatprep.mubr.f32.mxu1 %v4594_v7 }
 0x18a   :  { %4137 = vmatpush1.bf16.msra.mxu0 %v5900_v46  ;;  %4317 = vmatpush1.bf16.msra.mxu1 %v5505_v35  ;;  %v2671_v35 = vld [vmem:[#allocation2 + $0x2] sm:$0xff] }
 0x18b   :  { %4139 = vmatprep.subr.bf16.mxu0 %v5904_v47  ;;  %4319 = vmatprep.subr.bf16.mxu1 %v5509_v40  ;;  %v2777_v40 = vld [vmem:[#allocation2 + $0x3] sm:$0xff] }
 0x18e   :  { %4141 = vmatpush1.bf16.msra.mxu0 %v4140_v8  ;;  %4321 = vmatpush1.bf16.msra.mxu1 %v5524_v39  ;;  %v2883_v39 = vld [vmem:[#allocation2 + $0x4] sm:$0xff] }
 0x18f   :  { %4143 = vmatprep.subr.bf16.mxu0 %v4142_v49  ;;  %4323 = vmatprep.subr.bf16.mxu1 %v5527_v61  ;;  %v3033_v61 = vld [vmem:[%s6217_s6 + $0x80] sm:$0xff] }
 0x192   :  { %4145 = vmatpush1.bf16.msra.mxu0 %v4144_v19  ;;  %4325 = vmatpush1.bf16.msra.mxu1 %v5542_v10  ;;  %v3034_v10 = vld [vmem:[%s6217_s6 + $0x88] sm:$0xff] }
 0x193   :  { %4327 = vmatprep.subr.bf16.mxu1 %v5545_v0  ;;  %v3017_v0 = vld [vmem:[%s6217_s6] sm:$0xff] }
 0x195   :  { %1495 = vmatmul.mubr.f32.vlgmr.msra.gmra.mrb[4].mxu0 %v5671_v24  ;;  %v3021_v24 = vld [vmem:[%s6217_s6 + $0x20] sm:$0xff] }
 0x196   :  { %4329 = vmatpush1.bf16.msra.mxu1 %v5560_v13  ;;  %v4406_v13 = vpack.c.bf16 %v3034_v10, %v3033_v61 }
 0x197   :  { %4331 = vmatprep.subr.bf16.mxu1 %v5563_v14  ;;  %v3018_v14 = vld [vmem:[%s6217_s6 + $0x8] sm:$0xff] }
 0x198   :  { %4407 = vmatprep.subr.bf16.mxu0 %v4406_v13 }
 0x19a   :  { %4333 = vmatpush1.bf16.msra.mxu1 %v5578_v28  ;;  %v4408_v28 = vpack.c.bf16 %v3018_v14, %v3017_v0 }
 0x19b   :  { %4335 = vmatprep.subr.bf16.mxu1 %v5581_v31  ;;  %v3035_v31 = vld [vmem:[%s6217_s6 + $0x90] sm:$0xff] }
 0x19c   :  { %4409 = vmatpush3.bf16.msra.mxu0 %v4408_v28 }
 0x19e   :  { %4337 = vmatpush1.bf16.msra.mxu1 %v5596_v42  ;;  %v3036_v42 = vld [vmem:[%s6217_s6 + $0x98] sm:$0xff] }
 0x19f   :  { %4339 = vmatprep.subr.bf16.mxu1 %v5599_v44  ;;  %v4410_v44 = vpack.c.bf16 %v3036_v42, %v3035_v31 }
 0x1a1   :  { %4411 = vmatprep.subr.bf16.mxu0 %v4410_v44 }
 0x1a2   :  { %4341 = vmatpush1.bf16.msra.mxu1 %v5614_v52  ;;  %v3019_v52 = vld [vmem:[%s6217_s6 + $0x10] sm:$0xff] }
 0x1a3   :  { %4343 = vmatprep.subr.bf16.mxu1 %v5617_v54  ;;  %v3020_v54 = vld [vmem:[%s6217_s6 + $0x18] sm:$0xff] }
 0x1a5   :  { %2769 = vmatmul.mubr.f32.vlgmr.msra.gmra.mrb[12].mxu1 %v2671_v35 }
 0x1a6   :  { %4345 = vmatpush1.bf16.msra.mxu1 %v5632_v55  ;;  %2874 = vmatprep.mubr.f32.mxu1 %v4594_v7  ;;  %v4412_v55 = vpack.c.bf16 %v3020_v54, %v3019_v52 }
 0x1a7   :  { %4347 = vmatprep.subr.bf16.mxu1 %v5635_v2  ;;  %v3037_v2 = vld [vmem:[%s6217_s6 + $0xa0] sm:$0xff] }
 0x1a8   :  { %4413 = vmatpush3.bf16.msra.mxu0 %v4412_v55 }
 0x1aa   :  { %4349 = vmatpush1.bf16.msra.mxu1 %v5653_v22  ;;  %v3038_v22 = vld [vmem:[%s6217_s6 + $0xa8] sm:$0xff] }
 0x1ab   :  { %4351 = vmatprep.subr.bf16.mxu1 %v5658_v43  ;;  %v4414_v43 = vpack.c.bf16 %v3038_v22, %v3037_v2 }
 0x1ad   :  { %4415 = vmatprep.subr.bf16.mxu0 %v4414_v43 }
 0x1ae   :  { %4353 = vmatpush1.bf16.msra.mxu1 %v5680_v58  ;;  %v3022_v58 = vld [vmem:[%s6217_s6 + $0x28] sm:$0xff] }
 0x1af   :  { %4355 = vmatprep.subr.bf16.mxu1 %v5683_v16  ;;  %v4416_v16 = vpack.c.bf16 %v3022_v58, %v3021_v24 }
 0x1b1   :  { %4417 = vmatpush3.bf16.msra.mxu0 %v4416_v16 }
 0x1b2   :  { %4357 = vmatpush1.bf16.msra.mxu1 %v5698_v56  ;;  %v3039_v56 = vld [vmem:[%s6217_s6 + $0xb0] sm:$0xff] }
 0x1b3   :  { %4359 = vmatprep.subr.bf16.mxu1 %v5701_v1  ;;  %v3040_v1 = vld [vmem:[%s6217_s6 + $0xb8] sm:$0xff] }
 0x1b6   :  { %4361 = vmatpush1.bf16.msra.mxu1 %v5716_v21  ;;  %v3023_v21 = vld [vmem:[%s6217_s6 + $0x30] sm:$0xff] }
 0x1b7   :  { %4363 = vmatprep.subr.bf16.mxu1 %v5719_v25  ;;  %v4418_v25 = vpack.c.bf16 %v3040_v1, %v3039_v56  ;;  %v4596_v56 = vmov 1983009808  }
 0x1b8   :  { %v3091_v1 = vunpack.c.l.s4 %v4596_v56  ;;  %v3252_v56 = vld [vmem:[%s6219_s8 + $0x8] sm:$0xff] }
 0x1b9   :  { %4419 = vmatprep.subr.bf16.mxu0 %v4418_v25 }
 0x1ba   :  { %4365 = vmatpush1.bf16.msra.mxu1 %v5735_v48  ;;  %v3024_v48 = vld [vmem:[%s6217_s6 + $0x38] sm:$0xff] }
 0x1bb   :  { %4367 = vmatprep.subr.bf16.mxu1 %v5739_v23  ;;  %v3041_v23 = vld [vmem:[%s6217_s6 + $0xc0] sm:$0xff] }
 0x1be   :  { %4369 = vmatpush1.bf16.msra.mxu1 %v5756_v60  ;;  %v3042_v60 = vld [vmem:[%s6217_s6 + $0xc8] sm:$0xff] }
 0x1bf   :  { %4371 = vmatprep.subr.bf16.mxu1 %v5760_v51  ;;  %v4420_v51 = vpack.c.bf16 %v3024_v48, %v3023_v21  ;;  %v3093_v21 = vlaneseq }
 0x1c1   :  { %4421 = vmatpush3.bf16.msra.mxu0 %v4420_v51 }
 0x1c2   :  { %4373 = vmatpush1.bf16.msra.mxu1 %v5776_v63  ;;  %v4422_v63 = vpack.c.bf16 %v3042_v60, %v3041_v23 }
 0x1c3   :  { %4375 = vmatprep.subr.bf16.mxu1 %v5780_v12  ;;  %v3025_v12 = vld [vmem:[%s6217_s6 + $0x40] sm:$0xff] }
 0x1c4   :  { %4423 = vmatprep.subr.bf16.mxu0 %v4422_v63  ;;  %v3092_v63 = vunpack.c.0.s8 %v3091_v1  ;;  %v3253_v1 = vld [vmem:[%s6219_s8 + $0x10] sm:$0xff] }
 0x1c5   :  { %2875 = vmatmul.mubr.f32.vlgmr.msra.gmra.mrb[12].mxu1 %v2777_v40 }
 0x1c6   :  { %4377 = vmatpush1.bf16.msra.mxu1 %v5796_v6  ;;  %2980 = vmatprep.mubr.f32.mxu1 %v4594_v7  ;;  %v3026_v6 = vld [vmem:[%s6217_s6 + $0x48] sm:$0xff] }
 0x1c7   :  { %4379 = vmatprep.subr.bf16.mxu1 %v5800_v36  ;;  %v3043_v36 = vld [vmem:[%s6217_s6 + $0xd0] sm:$0xff] }
 0x1ca   :  { %4381 = vmatpush1.bf16.msra.mxu1 %v5817_v17  ;;  %v3044_v17 = vld [vmem:[%s6217_s6 + $0xd8] sm:$0xff] }
 0x1cb   :  { %4383 = vmatprep.subr.bf16.mxu1 %v5821_v57  ;;  %v4424_v57 = vpack.c.bf16 %v3026_v6, %v3025_v12  ;;  %v3094_v12 = vshrl.u32 %v3093_v21, 7  ;;  %v4597_v21 = vmov 0.0|0.0  }
 0x1cd   :  { %4425 = vmatpush3.bf16.msra.mxu0 %v4424_v57  ;;  %v3095_v6 = vsub.s32 %v3092_v63, %v3094_v12  ;;  %v3050_v57 = vld [vmem:[%s6217_s6 + $0x108] sm:$0xff]  ;;  %v3257_v12 = vld [vmem:[%s6219_s8 + $0x30] sm:$0x3] }
 0x1ce   :  { %4385 = vmatpush1.bf16.msra.mxu1 %v5838_v27  ;;  %v4426_v27 = vpack.c.bf16 %v3044_v17, %v3043_v36  ;;  %v3049_v17 = vld [vmem:[%s6217_s6 + $0x100] sm:$0xff] }
 0x1cf   :  { %4387 = vmatprep.subr.bf16.mxu1 %v5842_v53  ;;  %v3027_v53 = vld [vmem:[%s6217_s6 + $0x50] sm:$0xff] }
 0x1d0   :  { %4427 = vmatprep.subr.bf16.mxu0 %v4426_v27 }
 0x1d2   :  { %4389 = vmatpush1.bf16.msra.mxu1 %v5858_v33  ;;  %v4428_v33 = vpack.c.bf16 %v3028_v50, %v3027_v53  ;;  %v3067_v50 = vld [vmem:[%s6217_s6 + $0x190] sm:$0xff] }
 0x1d3   :  { %4391 = vmatprep.subr.bf16.mxu1 %v5862_v9  ;;  %v4430_v9 = vpack.c.bf16 %v3046_v62, %v3045_v5  ;;  %v3068_v5 = vld [vmem:[%s6217_s6 + $0x198] sm:$0xff] }
 0x1d4   :  { %4429 = vmatpush3.bf16.msra.mxu0 %v4428_v33  ;;  %v4440_v33 = vpack.c.bf16 %v3050_v57, %v3049_v17  ;;  %v3787_v57 = vld [vmem:[%s6218_s7] ss:$0 sm:$0xff]  ;;  %s4599_s7 = smov [#allocation5]  }
 0x1d5   :  { %4431 = vmatprep.subr.bf16.mxu0 %v4430_v9 }
 0x1d6   :  { %4393 = vmatpush1.bf16.msra.mxu1 %v5878_v11  ;;  %v4432_v11 = vpack.c.bf16 %v3030_v20, %v3029_v18  ;;  %v4442_v18 = vpack.c.bf16 %v3068_v5, %v3067_v50  ;;  %v3051_v20 = vld [vmem:[%s6217_s6 + $0x110] sm:$0xff] }
 0x1d7   :  { %4395 = vmatprep.subr.bf16.mxu1 %v5882_v29  ;;  %v4434_v29 = vpack.c.bf16 %v3048_v4, %v3047_v41  ;;  %v3052_v41 = vld [vmem:[%s6217_s6 + $0x118] sm:$0xff] }
 0x1d8   :  { %4433 = vmatpush3.bf16.msra.mxu0 %v4432_v11  ;;  %v3069_v11 = vld [vmem:[%s6217_s6 + $0x1a0] sm:$0xff]  ;;  %v4444_v38 = vpack.c.bf16 %v3052_v41, %v3051_v20 }
 0x1d9   :  { %4435 = vmatprep.subr.bf16.mxu0 %v4434_v29  ;;  %v3070_v29 = vld [vmem:[%s6217_s6 + $0x1a8] sm:$0xff] }
 0x1da   :  { %4397 = vmatpush1.bf16.msra.mxu1 %v5900_v46  ;;  %v3066_v46 = vld [vmem:[%s6217_s6 + $0x188] sm:$0xff]  ;;  %v4446_v30 = vpack.c.bf16 %v3070_v29, %v3069_v11 }
 0x1db   :  { %4399 = vmatprep.subr.bf16.mxu1 %v5904_v47  ;;  %v4438_v47 = vpack.c.bf16 %v3066_v46, %v3065_v15  ;;  %v3054_v15 = vld [vmem:[%s6217_s6 + $0x128] sm:$0xff]  ;;  %v3071_v46 = vld [vmem:[%s6217_s6 + $0x1b0] sm:$0xff] }
 0x1dc   :  { %4437 = vmatpush3.bf16.msra.mxu0 %v4436_v45  ;;  %v3053_v45 = vld [vmem:[%s6217_s6 + $0x120] sm:$0xff] }
 0x1dd   :  { %4439 = vmatprep.subr.bf16.mxu0 %v4438_v47  ;;  %v3072_v47 = vld [vmem:[%s6217_s6 + $0x1b8] sm:$0xff] }
 0x1de   :  { %4401 = vmatpush1.bf16.msra.mxu1 %v4140_v8 }
 0x1df   :  { %4403 = vmatprep.subr.bf16.mxu1 %v4142_v49 }
 0x1e2   :  { %4405 = vmatpush1.bf16.msra.mxu1 %v4144_v19 }
 0x1e5   :  { %2981 = vmatmul.mubr.f32.vlgmr.msra.gmra.mrb[12].mxu1 %v2883_v39 }
 0x268   :  { %v1496_v34 = vpop.f32.mrb[4].mxu0 }
 0x269   :  { %v1498_v32 = vpop.f32.mrb[5].mxu0 }
 0x26a   :  { %v1503_v37 = vmax.f32 %v1496_v34, %v1498_v32  ;;  %v4448_v34 = vpack.c.bf16 %v3054_v15, %v3053_v45  ;;  %v4450_v32 = vpack.c.bf16 %v3072_v47, %v3071_v46 }
 0x26c   :  { %v1511_v8 = vadd.f32 %v3572_v3, %v1503_v37  ;;  %v3056_v37 = vld [vmem:[%s6217_s6 + $0x138] sm:$0xff] }
 0x26e   :  { %v1512_v49 = vmax.f32 %v1511_v8, 0.0  ;;  %v3073_v8 = vld [vmem:[%s6217_s6 + $0x1c0] sm:$0xff] }
 0x270   :  { %1513 = vst [vmem:[#allocation3] sm:$0xff] %v1512_v49  ;;  %v3074_v49 = vld [vmem:[%s6217_s6 + $0x1c8] sm:$0xff] }
 0x277   :  { %v1514_v26 = vld [vmem:[#allocation3] sm:$0x1]  ;;  %v1515_v59 = vld [vmem:[#allocation3 + $0x1] sm:$0x1]  ;;  %v1518_v19 = vld [vmem:[#allocation3 + $0x2] sm:$0x1] }
 0x278   :  { %v1516_v35 = vmax.f32 %v1514_v26, %v1515_v59  ;;  %v1519_v40 = vld [vmem:[#allocation3 + $0x3] sm:$0x1]  ;;  %v1522_v39 = vld [vmem:[#allocation3 + $0x4] sm:$0x1]  ;;  %v1523_v61 = vld [vmem:[#allocation3 + $0x5] sm:$0x1]  ;;  %v4454_v59 = vpack.c.bf16 %v3074_v49, %v3073_v8 }
 0x279   :  { %v1520_v10 = vmax.f32 %v1518_v19, %v1519_v40  ;;  %v1524_v0 = vmax.f32 %v1522_v39, %v1523_v61  ;;  %v1526_v13 = vld [vmem:[#allocation3 + $0x6] sm:$0x1]  ;;  %v1527_v14 = vld [vmem:[#allocation3 + $0x7] sm:$0x1]  ;;  %v3057_v19 = vld [vmem:[%s6217_s6 + $0x140] sm:$0xff] }
 0x27a   :  { %1517 = vst [vmem:[#allocation4] sm:$0x1] %v1516_v35  ;;  %v1528_v28 = vmax.f32 %v1526_v13, %v1527_v14  ;;  %v3058_v35 = vld [vmem:[%s6217_s6 + $0x148] sm:$0xff]  ;;  %v3075_v40 = vld [vmem:[%s6217_s6 + $0x1d0] sm:$0xff]  ;;  %v3076_v39 = vld [vmem:[%s6217_s6 + $0x1d8] sm:$0xff] }
 0x27b   :  { %1521 = vst [vmem:[#allocation4 + $0x2] sm:$0x1] %v1520_v10  ;;  %1525 = vst [vmem:[#allocation4 + $0x4] sm:$0x1] %v1524_v0  ;;  %v4456_v61 = vpack.c.bf16 %v3058_v35, %v3057_v19  ;;  %v4458_v10 = vpack.c.bf16 %v3076_v39, %v3075_v40  ;;  %v3059_v0 = vld [vmem:[%s6217_s6 + $0x150] sm:$0xff]  ;;  %v3060_v13 = vld [vmem:[%s6217_s6 + $0x158] sm:$0xff] }
 0x27c   :  { %1529 = vst [vmem:[#allocation4 + $0x6] sm:$0x1] %v1528_v28  ;;  %v3077_v14 = vld [vmem:[%s6217_s6 + $0x1e0] sm:$0xff]  ;;  %v3078_v28 = vld [vmem:[%s6217_s6 + $0x1e8] sm:$0xff] }
 0x2b8   :  { %v2982_v31 = vpop.f32.mrb[12].mxu1 }
 0x2b9   :  { %v2984_v42 = vpop.f32.mrb[13].mxu1 }
 0x2ba   :  { %v2989_v44 = vmax.f32 %v2982_v31, %v2984_v42  ;;  %v4460_v31 = vpack.c.bf16 %v3060_v13, %v3059_v0  ;;  %v4462_v42 = vpack.c.bf16 %v3078_v28, %v3077_v14 }
 0x2bc   :  { %v2997_v52 = vadd.f32 %v3572_v3, %v2989_v44  ;;  %v3055_v3 = vld [vmem:[%s6217_s6 + $0x130] sm:$0xff]  ;;  %v3061_v44 = vld [vmem:[%s6217_s6 + $0x160] sm:$0xff] }
 0x2bd   :  { %v4452_v26 = vpack.c.bf16 %v3056_v37, %v3055_v3 }
 0x2be   :  { %v2998_v54 = vmax.f32 %v2997_v52, 0.0  ;;  %v3062_v52 = vld [vmem:[%s6217_s6 + $0x168] sm:$0xff] }
 0x2c0   :  { %2999 = vst [vmem:[#allocation3] sm:$0xff] %v2998_v54  ;;  %v3079_v54 = vld [vmem:[%s6217_s6 + $0x1f0] sm:$0xff] }
 0x2c7   :  { %v3000_v55 = vld [vmem:[#allocation3] sm:$0x1]  ;;  %v3001_v2 = vld [vmem:[#allocation3 + $0x1] sm:$0x1]  ;;  %v3004_v22 = vld [vmem:[#allocation3 + $0x2] sm:$0x1] }
 0x2c8   :  { %v3002_v43 = vmax.f32 %v3000_v55, %v3001_v2  ;;  %v3005_v24 = vld [vmem:[#allocation3 + $0x3] sm:$0x1]  ;;  %v3008_v58 = vld [vmem:[#allocation3 + $0x4] sm:$0x1]  ;;  %v3009_v16 = vld [vmem:[#allocation3 + $0x5] sm:$0x1]  ;;  %v4464_v2 = vpack.c.bf16 %v3062_v52, %v3061_v44 }
 0x2c9   :  { %v3006_v25 = vmax.f32 %v3004_v22, %v3005_v24  ;;  %v3010_v48 = vmax.f32 %v3008_v58, %v3009_v16  ;;  %v3012_v23 = vld [vmem:[#allocation3 + $0x6] sm:$0x1]  ;;  %v3013_v60 = vld [vmem:[#allocation3 + $0x7] sm:$0x1]  ;;  %v3080_v55 = vld [vmem:[%s6217_s6 + $0x1f8] sm:$0xff] }
 0x2ca   :  { %3003 = vst [vmem:[#allocation4 + $0x1] sm:$0x1] %v3002_v43  ;;  %v3014_v51 = vmax.f32 %v3012_v23, %v3013_v60  ;;  %v4466_v22 = vpack.c.bf16 %v3080_v55, %v3079_v54  ;;  %v3063_v43 = vld [vmem:[%s6217_s6 + $0x170] sm:$0xff]  ;;  %v3064_v24 = vld [vmem:[%s6217_s6 + $0x178] sm:$0xff]  ;;  %v3251_v16 = vld [vmem:[%s6219_s8] sm:$0xff] }
 0x2cb   :  { %3007 = vst [vmem:[#allocation4 + $0x3] sm:$0x1] %v3006_v25  ;;  %3011 = vst [vmem:[#allocation4 + $0x5] sm:$0x1] %v3010_v48  ;;  %v4468_v58 = vpack.c.bf16 %v3064_v24, %v3063_v43  ;;  %v4471_v25 = vpack.c.bf16 %v3252_v56, %v3251_v16  ;;  %v3254_v48 = vld [vmem:[%s6219_s8 + $0x18] sm:$0xff]  ;;  %v3255_v60 = vld [vmem:[%s6219_s8 + $0x20] sm:$0xff] }
 0x2cc   :  { %3015 = vst [vmem:[#allocation4 + $0x7] sm:$0x1] %v3014_v51  ;;  %v4474_v23 = vpack.c.bf16 %v3254_v48, %v3253_v1  ;;  %v3256_v51 = vld [vmem:[%s6219_s8 + $0x28] sm:$0xff] }
 0x2cd   :  { %v4477_v63 = vpack.c.bf16 %v3256_v51, %v3255_v60 }
 0x2d3   :  { %v3016_v36 = vld [vmem:[#allocation4] sm:$0xff] }
 0x2d4   :  { %v3096_v27 = vrot.slane %v3016_v36, %v3095_v6  ;;  %v3089_v53 = vcombine.high %v3016_v36, %v3016_v36 }
 0x2d6   :  { %v3104_v62 = vcombine.high %v3096_v27, %v3096_v27  ;;  %v3103_v9 = vrot.slane %v3089_v53, %v3095_v6 }
 0x2d8   :  { %3174 = vmatprep.mubr.f32.mxu0 %v3104_v62  ;;  %v3105_v4 = vcombine.high %v3103_v9, %v3103_v9 }
 0x2d9   :  { %3175 = vmatmul.mubr.f32.vlgmr.msra.gmra.mrb[6].mxu0 %v3096_v27 }
 0x2da   :  { %4441 = vmatpush3.bf16.msra.mxu0 %v4440_v33  ;;  %3244 = vmatprep.mubr.f32.mxu0 %v3105_v4 }
 0x2db   :  { %4443 = vmatprep.subr.bf16.mxu0 %v4442_v18 }
 0x2de   :  { %4445 = vmatpush3.bf16.msra.mxu0 %v4444_v38 }
 0x2df   :  { %4447 = vmatprep.subr.bf16.mxu0 %v4446_v30 }
 0x2e2   :  { %4449 = vmatpush3.bf16.msra.mxu0 %v4448_v34 }
 0x2e3   :  { %4451 = vmatprep.subr.bf16.mxu0 %v4450_v32 }
 0x2e6   :  { %4453 = vmatpush3.bf16.msra.mxu0 %v4452_v26 }
 0x2e7   :  { %4455 = vmatprep.subr.bf16.mxu0 %v4454_v59 }
 0x2ea   :  { %4457 = vmatpush3.bf16.msra.mxu0 %v4456_v61 }
 0x2eb   :  { %4459 = vmatprep.subr.bf16.mxu0 %v4458_v10 }
 0x2ee   :  { %4461 = vmatpush3.bf16.msra.mxu0 %v4460_v31 }
 0x2ef   :  { %4463 = vmatprep.subr.bf16.mxu0 %v4462_v42 }
 0x2f2   :  { %4465 = vmatpush3.bf16.msra.mxu0 %v4464_v2 }
 0x2f3   :  { %4467 = vmatprep.subr.bf16.mxu0 %v4466_v22 }
 0x2f6   :  { %4469 = vmatpush3.bf16.msra.mxu0 %v4468_v58 }
 0x2f7   :  { %4470 = vmatprep.subr.bf16.mxu0 %v4597_v21 }
 0x2f9   :  { %3245 = vmatmul.mubr.f32.vlgmr.msra.gmra.mrb[8].mxu0 %v3103_v9  ;;  %v3788_v9 = vld [vmem:[%s6220_s9] ss:$0 sm:$0xff]  ;;  %s3363_s9 = sshll.u32 %s4599_s7, 4  ;;  %s3364_s9 = int_to_ptr.vmem [resolvable:$true] %s3363_s9 }
 0x2fa   :  { %4472 = vmatpush3.bf16.msra.mxu0 %v4471_v25  ;;  %3883 = vmatprep.mubr.msk.f32.mxu0 %vm4598_vm5, %v4594_v7  ;;  %s4570_s26 = scalar_lea.vmem %s3364_s9, 32  ;;  %p4575_p1 = scmp.lt.s32.totalorder %s3364_s9, %s3364_s9 }
 0x2fb   :  { %4473 = vmatprep.subr.bf16.mxu0 %v4597_v21  ;;  %p4571_p0 = scmp.ne.s32.totalorder %s3364_s9, %s4570_s26  ;;  %p4576_p2 = scmp.lt.s32.totalorder %s4570_s26, %s4570_s26 }
 0x2fd   :  { %p4577_p3 = por %p4576_p2, %p4575_p1 }
 0x2fe   :  { %4475 = vmatpush3.bf16.msra.mxu0 %v4474_v23 }
 0x2ff   :  { %4476 = vmatprep.subr.bf16.mxu0 %v4597_v21  ;;  %p4578_p4 = pnand %p4577_p3, %p4571_p0 }
 0x302   :  { %4478 = vmatpush3.bf16.msra.mxu0 %v4477_v63 }
 0x303   :  { %3881 = vmatprep.subr.mxu0 %v4594_v7 }
 0x306   :  { %3882 = vmatpush3.msk.msra.mxu0 %vm3269_vm4, %v3257_v12 }
 0x3ac   :  { %v3823_v6 = vpop.f32.mrb[6].mxu0 }
 0x3ad   :  { %v3824_v36 = vpop.f32.mrb[7].mxu0 }
 0x3ae   :  { %v3825_v17 = vadd.f32 %v3824_v36, %v3823_v6 }
 0x3b0   :  { %v3177_v50 = vadd.f32 %v3825_v17, %v3787_v57 }
 0x3cc   :  { %v3858_v27 = vpop.f32.mrb[8].mxu0 }
 0x3cd   :  { %v3859_v53 = vpop.f32.mrb[9].mxu0 }
 0x3ce   :  { %v3860_v5 = vadd.f32 %v3859_v53, %v3858_v27 }
 0x3d0   :  { %v3247_v62 = vadd.f32 %v3860_v5, %v3177_v50 }
 0x3d2   :  { %v3250_v33 = vmax.f32 %v3247_v62, 0.0 }
 0x3d4   :  { %3884 = vmatmul.mubr.msk.f32.vlgmr.msra.gmra.mrb[10].mxu0 %vm3265_vm6, %v3250_v33 }
 0x4a7   :  { %v3339_v7 = vpop.f32.mrb[10].mxu0 }
 0x4a8   :  { %v3340_v18 = vadd.f32 %v3788_v9, %v3339_v7  ;;  %v3885_v20 = vpop.f32.mrb[11].mxu0 }
 0x4aa   :  { %v3344_v41 = vsel %vm3343_vm7, %v3340_v18, -inf }
 0x4ab   :  { %3345 = vmax.xlane.f32.xlu0 %v3344_v41 }
 0x538   :  { %v3346_v4 = vpop.xlane.xlu0 %3345 }
 0x539   :  { %v3347_v11 = vsub.f32 %v3340_v18, %v3346_v4 }
 0x53b   :  { %v3348_v29 = vmul.f32 1.442695, %v3347_v11 }
 0x53d   :  { %4566 = vpow2.f32 %v3348_v29 }
 0x547   :  { %v4567_v38 = vpop.eup %4566 }
 0x548   :  { %v3350_v30 = vsel %vm3343_vm7, %v4567_v38, 0.0 }
 0x549   :  { %3351 = vadd.xlane.f32.xlu0 %v3350_v30 }
 0x5d6   :  { %v3352_v45 = vpop.xlane.xlu0 %3351 }
 0x5d7   :  { %4568 = vlog2.f32 %v3352_v45 }
 0x5e1   :  { %v4569_v15 = vpop.eup %4568 }
 0x5e2   :  { %v3354_v46 = vmul.f32 0.6931472, %v4569_v15 }
 0x5e4   :  { %v3355_v47 = vsub.f32 %v3347_v11, %v3354_v46 }
 0x5e6   :  { %3356 = vst.msk [vmem:[#allocation5] sm:$0x3] %vm3343_vm7, %v3355_v47 }
 0x5e7   :  { %4581 = shalt.err (!%p4578_p4)
}
 0x5e8   :  { %s4582_s28 = scalar_lea.hbm %s6221_s10, 32 }
 0x5e9   :  { %p4583_p5 = scmp.ne.s32.totalorder %s6221_s10, %s4582_s28  ;;  %p4586_p6 = scmp.lt.u32.totalorder %s4582_s28, %s6221_s10 }
 0x5eb   :  { %p4588_p7 = pnand %p4586_p6, %p4583_p5 }
 0x5ed   :  { %4591 = shalt.err (!%p4588_p7)
}
 0x5ee   :  { %3366 = dma.vmem_to_hbm [thread:$0]  %s3364_s9, 32, %s6221_s10, [#allocation6]  }
 0x5ef   :  { %4592 = dma.done.wait [#allocation6], 32  }
 0x5f0   :  { %4593 = vsyncadd [#allocation6], 4294967264 }
 0x5f1   :  { %3370 = vsyncpa [#allocation6], 1 }

</bundles_post_ra>
